<compile_context>
chip_gen: v7x
topology: tpu7x:2x2x1
jax: 0.10.0
libtpu: 0.0.40
codegen_flags: <defaults>
</compile_context>

<pallas_src>
import jax
import jax.numpy as jnp
from jax import lax
from jax.experimental import pallas as pl
from jax.experimental.pallas import tpu as pltpu

# ---- small config consistent with a CLIP-ViT vision tower ----
BATCH = 2
CHANNELS = 3
IMAGE = 16
PATCH = 4
GRID_HW = IMAGE // PATCH
NUM_PATCHES = GRID_HW * GRID_HW            # 16
SEQ = NUM_PATCHES + 1                      # 17 = CLS + patches
SEQ_PAD = 24                               # padded tokens per image (3 x 8)
TOKENS = BATCH * SEQ_PAD                   # 48 rows in the fused token tile
HIDDEN = 32                                # vision hidden size
HEADS = 4
HEAD_DIM = HIDDEN // HEADS                 # 8
MLP = 64
MLP_PAD = 128                              # lane-dense MLP width
LAYERS = 2
EPS = 1e-5
NEG_INF = -1e30
CPP = CHANNELS * PATCH * PATCH             # 48 = im2col row width

# fused projection column layout: [ Q*scale | K | zero pad | per-head Wv@Wo ]
Q_OFF = 0
K_OFF = HIDDEN
VO_OFF = 4 * HIDDEN                        # 128 (lane aligned)
PROJ = VO_OFF + HEADS * HIDDEN             # 256


def _layer_norm(x, g, b):
    mu = jnp.mean(x, axis=-1, keepdims=True)
    var = jnp.mean((x - mu) ** 2, axis=-1, keepdims=True)
    return (x - mu) * lax.rsqrt(var + EPS) * g + b


# --------------------------------------------------------------------------
# Fused kernel body, invoked once per encoder layer (grid=(LAYERS,)).
# The output block is resident across the grid (same block index every step)
# and doubles as the activation buffer.
# --------------------------------------------------------------------------
def _vision_kernel(patch_ref, pw_ref, emb_ref, plg_ref, plb_ref, bias_ref,
                   ln1g_ref, ln1b_ref, wp_ref, bp_ref, bo_ref,
                   ln2g_ref, ln2b_ref, w1_ref, b1_ref, w2_ref, b2_ref,
                   o_ref):
    f32 = jnp.float32
    bf16 = jnp.bfloat16

    # ---- step 0: patch-embed matmul + (CLS + pos) add + CLIP pre_layrnorm,
    #      written as one dense [T, D] store ----
    @pl.when(pl.program_id(0) == 0)
    def _():
        pe = jnp.dot(patch_ref[...], pw_ref[...], preferred_element_type=f32)
        o_ref[...] = _layer_norm(pe + emb_ref[...], plg_ref[...], plb_ref[...])

    x = o_ref[...]                                          # [T, D] f32
    bias = bias_ref[...]                                    # [T, T] f32

    # ---- self-attention block (pre-LN); W_O folded into the value path ----
    h = _layer_norm(x, ln1g_ref[...], ln1b_ref[...])
    proj = jnp.dot(h.astype(bf16), wp_ref[...],
                   preferred_element_type=f32) + bp_ref[...]     # [T, PROJ]
    proj_bf = proj.astype(bf16)                                  # cast once

    acc = jnp.zeros((TOKENS, HIDDEN), f32)
    for hh in range(HEADS):                                      # static
        q = proj_bf[:, Q_OFF + hh * HEAD_DIM:Q_OFF + (hh + 1) * HEAD_DIM]
        k = proj_bf[:, K_OFF + hh * HEAD_DIM:K_OFF + (hh + 1) * HEAD_DIM]
        v = proj_bf[:, VO_OFF + hh * HIDDEN:VO_OFF + (hh + 1) * HIDDEN]
        s = lax.dot_general(q, k, (((1,), (1,)), ((), ())),
                            preferred_element_type=f32)          # [T, T]
        s = s + bias
        s = s - jnp.max(s, axis=-1, keepdims=True)
        p = jnp.exp(s)
        p = p * pl.reciprocal(jnp.sum(p, axis=-1, keepdims=True), approx=True)
        acc = acc + jnp.dot(p.astype(bf16), v, preferred_element_type=f32)
    x = x + acc + bo_ref[...]

    # ---- MLP block (quick_gelu, lane dims padded to 128) ----
    h2 = _layer_norm(x, ln2g_ref[...], ln2b_ref[...])
    m = jnp.dot(h2.astype(bf16), w1_ref[...],
                preferred_element_type=f32) + b1_ref[...]        # [T, 128]
    m = m * jax.nn.sigmoid(1.702 * m)
    y = jnp.dot(m.astype(bf16), w2_ref[...],
                preferred_element_type=f32) + b2_ref[...]        # [T, D]
    o_ref[...] = x + y                                           # dense store


# --------------------------------------------------------------------------
# Parameter init (deterministic, synthetic) and packing for the kernel
# --------------------------------------------------------------------------
def init_params(key):
    def nrm(k, shape):
        return 0.02 * jax.random.normal(k, shape, dtype=jnp.float32)

    keys = jax.random.split(key, 4 + LAYERS)
    params = {
        # Conv2d weight [D, C, P, P], bias=False (matches CLIPVisionEmbeddings)
        "patch_w": nrm(keys[0], (HIDDEN, CHANNELS, PATCH, PATCH)),
        "cls": nrm(keys[1], (1, HIDDEN)),
        "pos": nrm(keys[2], (SEQ, HIDDEN)),
        "preln_g": jnp.ones((1, HIDDEN), jnp.float32),
        "preln_b": jnp.zeros((1, HIDDEN), jnp.float32),
        "layers": [],
    }
    for l in range(LAYERS):
        lk = jax.random.split(keys[4 + l], 6)
        params["layers"].append({
            "ln1_g": jnp.ones((1, HIDDEN), jnp.float32),
            "ln1_b": jnp.zeros((1, HIDDEN), jnp.float32),
            "wq": nrm(lk[0], (HIDDEN, HIDDEN)),
            "bq": jnp.zeros((1, HIDDEN), jnp.float32),
            "wk": nrm(lk[1], (HIDDEN, HIDDEN)),
            "bk": jnp.zeros((1, HIDDEN), jnp.float32),
            "wv": nrm(lk[2], (HIDDEN, HIDDEN)),
            "bv": jnp.zeros((1, HIDDEN), jnp.float32),
            "wo": nrm(lk[3], (HIDDEN, HIDDEN)),
            "bo": jnp.zeros((1, HIDDEN), jnp.float32),
            "ln2_g": jnp.ones((1, HIDDEN), jnp.float32),
            "ln2_b": jnp.zeros((1, HIDDEN), jnp.float32),
            "w1": nrm(lk[4], (HIDDEN, MLP)),
            "b1": jnp.zeros((1, MLP), jnp.float32),
            "w2": nrm(lk[5], (MLP, HIDDEN)),
            "b2": jnp.zeros((1, HIDDEN), jnp.float32),
        })
    return params


def _pack_params(params):
    """Fuse Q/K and the W_O-folded value path into one lane-dense [D, 256]
    projection per layer (attention scale folded into Q), zero-pad the MLP
    lane dims to 128, stack per-layer weights along a leading LAYERS axis,
    and cast matmul weights to bf16 (kernel accumulates in f32)."""
    scale = HEAD_DIM ** -0.5
    bf16 = jnp.bfloat16

    def per_layer(fn):
        return jnp.stack([fn(lp) for lp in params["layers"]], axis=0)

    def fused_w(p):
        wvo = jnp.concatenate(
            [p["wv"][:, h * HEAD_DIM:(h + 1) * HEAD_DIM]
             @ p["wo"][h * HEAD_DIM:(h + 1) * HEAD_DIM, :]
             for h in range(HEADS)], axis=1)                     # [D, H*D]
        pad = jnp.zeros((HIDDEN, VO_OFF - 2 * HIDDEN), jnp.float32)
        return jnp.concatenate([p["wq"] * scale, p["wk"], pad, wvo], axis=1)

    def fused_b(p):
        bvo = jnp.concatenate(
            [p["bv"][:, h * HEAD_DIM:(h + 1) * HEAD_DIM]
             @ p["wo"][h * HEAD_DIM:(h + 1) * HEAD_DIM, :]
             for h in range(HEADS)], axis=1)                     # [1, H*D]
        pad = jnp.zeros((1, VO_OFF - 2 * HIDDEN), jnp.float32)
        return jnp.concatenate([p["bq"] * scale, p["bk"], pad, bvo], axis=1)

    return {
        "patch_w": params["patch_w"].reshape(HIDDEN, -1).T.astype(bf16),
        "cls": params["cls"],
        "pos": params["pos"],
        "preln_g": params["preln_g"],
        "preln_b": params["preln_b"],
        "ln1_g": per_layer(lambda p: p["ln1_g"]),
        "ln1_b": per_layer(lambda p: p["ln1_b"]),
        "w_proj": per_layer(fused_w).astype(bf16),               # [L, D, 256]
        "b_proj": per_layer(fused_b),                            # [L, 1, 256]
        "bo": per_layer(lambda p: p["bo"]),
        "ln2_g": per_layer(lambda p: p["ln2_g"]),
        "ln2_b": per_layer(lambda p: p["ln2_b"]),
        "w1": per_layer(lambda p: jnp.pad(
            p["w1"], ((0, 0), (0, MLP_PAD - MLP)))).astype(bf16),
        "b1": per_layer(lambda p: jnp.pad(
            p["b1"], ((0, 0), (0, MLP_PAD - MLP)))),
        "w2": per_layer(lambda p: jnp.pad(
            p["w2"], ((0, MLP_PAD - MLP), (0, 0)))).astype(bf16),
        "b2": per_layer(lambda p: p["b2"]),
    }


# --------------------------------------------------------------------------
# Forward
# --------------------------------------------------------------------------
def vision_encoder_forward(images, params):
    """images: [B, C, H, W] (NCHW) -> last_hidden_state [B, SEQ, HIDDEN]."""
    B, C, H, W = images.shape
    assert (B, C, H, W) == (BATCH, CHANNELS, IMAGE, IMAGE), images.shape
    gh, gw = H // PATCH, W // PATCH
    pk = _pack_params(params)

    # im2col glue (plain JAX), with rows placed directly at padded token
    # positions (row 0 per image is the CLS slot, rows SEQ..SEQ_PAD-1 are
    # padding) so the kernel does zero row-wise assembly.  Cast bf16 once.
    p = images.reshape(B, C, gh, PATCH, gw, PATCH)
    p = p.transpose(0, 2, 4, 1, 3, 5).reshape(B, NUM_PATCHES, CPP)
    p = jnp.pad(p, ((0, 0), (1, SEQ_PAD - SEQ), (0, 0)))
    patches = p.reshape(B * SEQ_PAD, CPP).astype(jnp.bfloat16)

    # CLS + position embedding as one dense additive tile (zeros on padding).
    base = jnp.concatenate([pk["cls"] + pk["pos"][0:1], pk["pos"][1:SEQ]], 0)
    base = jnp.pad(base, ((0, SEQ_PAD - SEQ), (0, 0)))
    embed_add = jnp.tile(base, (BATCH, 1))                        # [T, D]

    # Block-diagonal additive attention mask: tokens attend only within their
    # own image; padded key columns are masked out everywhere.
    tok = jnp.arange(TOKENS, dtype=jnp.int32)
    img = tok // SEQ_PAD
    key_valid = (tok % SEQ_PAD) < SEQ
    attn_bias = jnp.where((img[:, None] == img[None, :]) & key_valid[None, :],
                          0.0, NEG_INF).astype(jnp.float32)

    def resident(shape):          # whole-array block, same for every layer
        return pl.BlockSpec(shape, lambda l: (0, 0))

    def streamed(shape):          # per-layer block along the LAYERS grid axis
        return pl.BlockSpec((None,) + shape, lambda l: (l, 0, 0))

    out = pl.pallas_call(
        _vision_kernel,
        out_shape=jax.ShapeDtypeStruct((TOKENS, HIDDEN), jnp.float32),
        grid=(LAYERS,),
        in_specs=[
            resident((TOKENS, CPP)),        # patches (im2col, padded rows)
            resident((CPP, HIDDEN)),        # patch embedding weight
            resident((TOKENS, HIDDEN)),     # CLS + pos additive tile
            resident((1, HIDDEN)),          # pre-LN gamma
            resident((1, HIDDEN)),          # pre-LN beta
            resident((TOKENS, TOKENS)),     # attention bias
            streamed((1, HIDDEN)),          # ln1 gamma
            streamed((1, HIDDEN)),          # ln1 beta
            streamed((HIDDEN, PROJ)),       # fused Q/K/VO weight
            streamed((1, PROJ)),            # fused Q/K/VO bias
            streamed((1, HIDDEN)),          # attention out-proj bias
            streamed((1, HIDDEN)),          # ln2 gamma
            streamed((1, HIDDEN)),          # ln2 beta
            streamed((HIDDEN, MLP_PAD)),    # MLP fc1 (lane-padded)
            streamed((1, MLP_PAD)),         # MLP fc1 bias
            streamed((MLP_PAD, HIDDEN)),    # MLP fc2 (row-padded)
            streamed((1, HIDDEN)),          # MLP fc2 bias
        ],
        out_specs=pl.BlockSpec((TOKENS, HIDDEN), lambda l: (0, 0)),
        compiler_params=pltpu.CompilerParams(
            dimension_semantics=("arbitrary",),
            vmem_limit_bytes=32 * 1024 * 1024),
    )(patches, pk["patch_w"], embed_add, pk["preln_g"], pk["preln_b"],
      attn_bias, pk["ln1_g"], pk["ln1_b"], pk["w_proj"], pk["b_proj"],
      pk["bo"], pk["ln2_g"], pk["ln2_b"], pk["w1"], pk["b1"], pk["w2"],
      pk["b2"])

    # strip token padding only at the very end (wrapper-side view change)
    return out.reshape(BATCH, SEQ_PAD, HIDDEN)[:, :SEQ, :]


def get_hidden_size():
    return HIDDEN


if __name__ == "__main__":
    key = jax.random.PRNGKey(0)
    pkey, ikey = jax.random.split(key)
    params = init_params(pkey)
    images = jax.random.normal(ikey, (BATCH, CHANNELS, IMAGE, IMAGE),
                               dtype=jnp.float32)
    out = vision_encoder_forward(images, params)
    out = jax.block_until_ready(out)
    assert out.shape == (BATCH, SEQ, HIDDEN), out.shape
    assert bool(jnp.all(jnp.isfinite(out)))
    print("KERNEL_OK")
</pallas_src>

<mosaic_0001>
module attributes {stable_mosaic.version = 11 : i64} {
  func.func @_vision_kernel(%arg0: i32, %arg1: memref<48x48xbf16, #tpu.memory_space<vmem>>, %arg2: memref<48x32xbf16, #tpu.memory_space<vmem>>, %arg3: memref<48x32xf32, #tpu.memory_space<vmem>>, %arg4: memref<1x32xf32, #tpu.memory_space<vmem>>, %arg5: memref<1x32xf32, #tpu.memory_space<vmem>>, %arg6: memref<48x48xf32, #tpu.memory_space<vmem>>, %arg7: memref<1x1x32xf32, #tpu.memory_space<vmem>>, %arg8: memref<1x1x32xf32, #tpu.memory_space<vmem>>, %arg9: memref<1x32x256xbf16, #tpu.memory_space<vmem>>, %arg10: memref<1x1x256xf32, #tpu.memory_space<vmem>>, %arg11: memref<1x1x32xf32, #tpu.memory_space<vmem>>, %arg12: memref<1x1x32xf32, #tpu.memory_space<vmem>>, %arg13: memref<1x1x32xf32, #tpu.memory_space<vmem>>, %arg14: memref<1x32x128xbf16, #tpu.memory_space<vmem>>, %arg15: memref<1x1x128xf32, #tpu.memory_space<vmem>>, %arg16: memref<1x128x32xbf16, #tpu.memory_space<vmem>>, %arg17: memref<1x1x32xf32, #tpu.memory_space<vmem>>, %arg18: memref<48x32xf32, #tpu.memory_space<vmem>>) attributes {dimension_semantics = [#tpu.dimension_semantics<arbitrary>], iteration_bounds = array<i64: 2>, scalar_prefetch = 0 : i64, scratch_operands = 0 : i64, tpu.core_type = #tpu.core_type<tc>, window_params = [{pipeline_mode = #tpu.pipeline_mode<synchronous>, transform_indices = @transform_0, window_bounds = array<i64: 48, 48>}, {pipeline_mode = #tpu.pipeline_mode<synchronous>, transform_indices = @transform_1, window_bounds = array<i64: 48, 32>}, {pipeline_mode = #tpu.pipeline_mode<synchronous>, transform_indices = @transform_2, window_bounds = array<i64: 48, 32>}, {pipeline_mode = #tpu.pipeline_mode<synchronous>, transform_indices = @transform_3, window_bounds = array<i64: 1, 32>}, {pipeline_mode = #tpu.pipeline_mode<synchronous>, transform_indices = @transform_4, window_bounds = array<i64: 1, 32>}, {pipeline_mode = #tpu.pipeline_mode<synchronous>, transform_indices = @transform_5, window_bounds = array<i64: 48, 48>}, {transform_indices = @transform_6, window_bounds = array<i64: 1, 1, 32>}, {transform_indices = @transform_7, window_bounds = array<i64: 1, 1, 32>}, {transform_indices = @transform_8, window_bounds = array<i64: 1, 32, 256>}, {transform_indices = @transform_9, window_bounds = array<i64: 1, 1, 256>}, {transform_indices = @transform_10, window_bounds = array<i64: 1, 1, 32>}, {transform_indices = @transform_11, window_bounds = array<i64: 1, 1, 32>}, {transform_indices = @transform_12, window_bounds = array<i64: 1, 1, 32>}, {transform_indices = @transform_13, window_bounds = array<i64: 1, 32, 128>}, {transform_indices = @transform_14, window_bounds = array<i64: 1, 1, 128>}, {transform_indices = @transform_15, window_bounds = array<i64: 1, 128, 32>}, {transform_indices = @transform_16, window_bounds = array<i64: 1, 1, 32>}, {pipeline_mode = #tpu.pipeline_mode<synchronous>, transform_indices = @transform_17, window_bounds = array<i64: 48, 32>}]} {
    %c0_i32 = arith.constant 0 : i32
    %0 = arith.cmpi eq, %arg0, %c0_i32 : i32
    %1 = arith.extui %0 : i1 to i32
    %c0_i32_0 = arith.constant 0 : i32
    %2 = arith.cmpi ne, %1, %c0_i32_0 : i32
    scf.if %2 {
      %c0_70 = arith.constant 0 : index
      %c0_71 = arith.constant 0 : index
      %170 = vector.load %arg1[%c0_70, %c0_71] : memref<48x48xbf16, #tpu.memory_space<vmem>>, vector<48x48xbf16>
      %c0_72 = arith.constant 0 : index
      %c0_73 = arith.constant 0 : index
      %171 = vector.load %arg2[%c0_72, %c0_73] : memref<48x32xbf16, #tpu.memory_space<vmem>>, vector<48x32xbf16>
      %cst_74 = arith.constant dense<0.000000e+00> : vector<48x32xf32>
      %172 = tpu.matmul %170, %171, %cst_74 {dimension_numbers = #tpu.dot_dimension_numbers<[1], [0], [0], [1], [0, 0, 1, 1], [], []>} : vector<48x48xbf16>, vector<48x32xbf16>, vector<48x32xf32> -> vector<48x32xf32>
      %c0_75 = arith.constant 0 : index
      %c0_76 = arith.constant 0 : index
      %173 = vector.load %arg3[%c0_75, %c0_76] : memref<48x32xf32, #tpu.memory_space<vmem>>, vector<48x32xf32>
      %174 = arith.addf %172, %173 : vector<48x32xf32>
      %c0_77 = arith.constant 0 : index
      %c0_78 = arith.constant 0 : index
      %175 = vector.load %arg4[%c0_77, %c0_78] : memref<1x32xf32, #tpu.memory_space<vmem>>, vector<1x32xf32>
      %c0_79 = arith.constant 0 : index
      %c0_80 = arith.constant 0 : index
      %176 = vector.load %arg5[%c0_79, %c0_80] : memref<1x32xf32, #tpu.memory_space<vmem>>, vector<1x32xf32>
      %cst_81 = arith.constant dense<0.000000e+00> : vector<48xf32>
      %177 = vector.multi_reduction <add>, %174, %cst_81 [1] : vector<48x32xf32> to vector<48xf32>
      %178 = vector.shape_cast %177 : vector<48xf32> to vector<48x1xf32>
      %cst_82 = arith.constant 3.200000e+01 : f32
      %179 = vector.broadcast %cst_82 : f32 to vector<48x1xf32>
      %180 = arith.divf %178, %179 : vector<48x1xf32>
      %181 = vector.broadcast %180 : vector<48x1xf32> to vector<48x32xf32>
      %182 = arith.subf %174, %181 : vector<48x32xf32>
      %183 = arith.mulf %182, %182 : vector<48x32xf32>
      %cst_83 = arith.constant dense<0.000000e+00> : vector<48xf32>
      %184 = vector.multi_reduction <add>, %183, %cst_83 [1] : vector<48x32xf32> to vector<48xf32>
      %185 = vector.shape_cast %184 : vector<48xf32> to vector<48x1xf32>
      %cst_84 = arith.constant 3.200000e+01 : f32
      %186 = vector.broadcast %cst_84 : f32 to vector<48x1xf32>
      %187 = arith.divf %185, %186 : vector<48x1xf32>
      %188 = vector.broadcast %180 : vector<48x1xf32> to vector<48x32xf32>
      %189 = arith.subf %174, %188 : vector<48x32xf32>
      %cst_85 = arith.constant 9.99999974E-6 : f32
      %190 = vector.broadcast %cst_85 : f32 to vector<48x1xf32>
      %191 = arith.addf %187, %190 : vector<48x1xf32>
      %192 = math.rsqrt %191 : vector<48x1xf32>
      %193 = vector.broadcast %192 : vector<48x1xf32> to vector<48x32xf32>
      %194 = arith.mulf %189, %193 : vector<48x32xf32>
      %195 = vector.broadcast %175 : vector<1x32xf32> to vector<48x32xf32>
      %196 = arith.mulf %194, %195 : vector<48x32xf32>
      %197 = vector.broadcast %176 : vector<1x32xf32> to vector<48x32xf32>
      %198 = arith.addf %196, %197 : vector<48x32xf32>
      %c0_86 = arith.constant 0 : index
      %c0_87 = arith.constant 0 : index
      %199 = vector.load %arg18[%c0_86, %c0_87] : memref<48x32xf32, #tpu.memory_space<vmem>>, vector<48x32xf32>
      tpu.vector_store %arg18[%c0_86, %c0_87], %198 {strides = array<i32>} : memref<48x32xf32, #tpu.memory_space<vmem>>, vector<48x32xf32>,
    } else {
    }
    %c0 = arith.constant 0 : index
    %c0_1 = arith.constant 0 : index
    %3 = vector.load %arg18[%c0, %c0_1] : memref<48x32xf32, #tpu.memory_space<vmem>>, vector<48x32xf32>
    %c0_2 = arith.constant 0 : index
    %c0_3 = arith.constant 0 : index
    %4 = vector.load %arg6[%c0_2, %c0_3] : memref<48x48xf32, #tpu.memory_space<vmem>>, vector<48x48xf32>
    %c0_4 = arith.constant 0 : index
    %c0_5 = arith.constant 0 : index
    %c0_6 = arith.constant 0 : index
    %5 = vector.load %arg7[%c0_4, %c0_5, %c0_6] : memref<1x1x32xf32, #tpu.memory_space<vmem>>, vector<1x1x32xf32>
    %6 = vector.shape_cast %5 : vector<1x1x32xf32> to vector<1x32xf32>
    %c0_7 = arith.constant 0 : index
    %c0_8 = arith.constant 0 : index
    %c0_9 = arith.constant 0 : index
    %7 = vector.load %arg8[%c0_7, %c0_8, %c0_9] : memref<1x1x32xf32, #tpu.memory_space<vmem>>, vector<1x1x32xf32>
    %8 = vector.shape_cast %7 : vector<1x1x32xf32> to vector<1x32xf32>
    %cst = arith.constant dense<0.000000e+00> : vector<48xf32>
    %9 = vector.multi_reduction <add>, %3, %cst [1] : vector<48x32xf32> to vector<48xf32>
    %10 = vector.shape_cast %9 : vector<48xf32> to vector<48x1xf32>
    %cst_10 = arith.constant 3.200000e+01 : f32
    %11 = vector.broadcast %cst_10 : f32 to vector<48x1xf32>
    %12 = arith.divf %10, %11 : vector<48x1xf32>
    %13 = vector.broadcast %12 : vector<48x1xf32> to vector<48x32xf32>
    %14 = arith.subf %3, %13 : vector<48x32xf32>
    %15 = arith.mulf %14, %14 : vector<48x32xf32>
    %cst_11 = arith.constant dense<0.000000e+00> : vector<48xf32>
    %16 = vector.multi_reduction <add>, %15, %cst_11 [1] : vector<48x32xf32> to vector<48xf32>
    %17 = vector.shape_cast %16 : vector<48xf32> to vector<48x1xf32>
    %cst_12 = arith.constant 3.200000e+01 : f32
    %18 = vector.broadcast %cst_12 : f32 to vector<48x1xf32>
    %19 = arith.divf %17, %18 : vector<48x1xf32>
    %20 = vector.broadcast %12 : vector<48x1xf32> to vector<48x32xf32>
    %21 = arith.subf %3, %20 : vector<48x32xf32>
    %cst_13 = arith.constant 9.99999974E-6 : f32
    %22 = vector.broadcast %cst_13 : f32 to vector<48x1xf32>
    %23 = arith.addf %19, %22 : vector<48x1xf32>
    %24 = math.rsqrt %23 : vector<48x1xf32>
    %25 = vector.broadcast %24 : vector<48x1xf32> to vector<48x32xf32>
    %26 = arith.mulf %21, %25 : vector<48x32xf32>
    %27 = vector.broadcast %6 : vector<1x32xf32> to vector<48x32xf32>
    %28 = arith.mulf %26, %27 : vector<48x32xf32>
    %29 = vector.broadcast %8 : vector<1x32xf32> to vector<48x32xf32>
    %30 = arith.addf %28, %29 : vector<48x32xf32>
    %31 = arith.truncf %30 : vector<48x32xf32> to vector<48x32xbf16>
    %c0_14 = arith.constant 0 : index
    %c0_15 = arith.constant 0 : index
    %c0_16 = arith.constant 0 : index
    %32 = vector.load %arg9[%c0_14, %c0_15, %c0_16] : memref<1x32x256xbf16, #tpu.memory_space<vmem>>, vector<1x32x256xbf16>
    %33 = vector.shape_cast %32 : vector<1x32x256xbf16> to vector<32x256xbf16>
    %cst_17 = arith.constant dense<0.000000e+00> : vector<48x256xf32>
    %34 = tpu.matmul %31, %33, %cst_17 {dimension_numbers = #tpu.dot_dimension_numbers<[1], [0], [0], [1], [0, 0, 1, 1], [], []>} : vector<48x32xbf16>, vector<32x256xbf16>, vector<48x256xf32> -> vector<48x256xf32>
    %c0_18 = arith.constant 0 : index
    %c0_19 = arith.constant 0 : index
    %c0_20 = arith.constant 0 : index
    %35 = vector.load %arg10[%c0_18, %c0_19, %c0_20] : memref<1x1x256xf32, #tpu.memory_space<vmem>>, vector<1x1x256xf32>
    %36 = vector.shape_cast %35 : vector<1x1x256xf32> to vector<1x256xf32>
    %37 = vector.broadcast %36 : vector<1x256xf32> to vector<48x256xf32>
    %38 = arith.addf %34, %37 : vector<48x256xf32>
    %39 = arith.truncf %38 : vector<48x256xf32> to vector<48x256xbf16>
    %cst_21 = arith.constant 0.000000e+00 : f32
    %40 = vector.broadcast %cst_21 : f32 to vector<48x32xf32>
    %41 = vector.extract_strided_slice %39 {offsets = [0, 0], sizes = [48, 8], strides = [1, 1]} : vector<48x256xbf16> to vector<48x8xbf16>
    %42 = vector.extract_strided_slice %39 {offsets = [0, 32], sizes = [48, 8], strides = [1, 1]} : vector<48x256xbf16> to vector<48x8xbf16>
    %43 = vector.extract_strided_slice %39 {offsets = [0, 128], sizes = [48, 32], strides = [1, 1]} : vector<48x256xbf16> to vector<48x32xbf16>
    %cst_22 = arith.constant dense<0.000000e+00> : vector<48x48xf32>
    %44 = tpu.matmul %41, %42, %cst_22 {dimension_numbers = #tpu.dot_dimension_numbers<[1], [1], [0], [0], [0, 0, 1, 0], [], []>} : vector<48x8xbf16>, vector<48x8xbf16>, vector<48x48xf32> -> vector<48x48xf32>
    %45 = arith.addf %44, %4 : vector<48x48xf32>
    %cst_23 = arith.constant dense<0xFF800000> : vector<48xf32>
    %46 = vector.multi_reduction <maximumf>, %45, %cst_23 [1] : vector<48x48xf32> to vector<48xf32>
    %47 = vector.shape_cast %46 : vector<48xf32> to vector<48x1xf32>
    %48 = vector.broadcast %47 : vector<48x1xf32> to vector<48x48xf32>
    %49 = arith.subf %45, %48 : vector<48x48xf32>
    %50 = math.exp %49 : vector<48x48xf32>
    %cst_24 = arith.constant dense<0.000000e+00> : vector<48xf32>
    %51 = vector.multi_reduction <add>, %50, %cst_24 [1] : vector<48x48xf32> to vector<48xf32>
    %52 = vector.shape_cast %51 : vector<48xf32> to vector<48x1xf32>
    %53 = tpu.reciprocal %52 {approx = true} : vector<48x1xf32> -> vector<48x1xf32>
    %54 = vector.broadcast %53 : vector<48x1xf32> to vector<48x48xf32>
    %55 = arith.mulf %50, %54 : vector<48x48xf32>
    %56 = arith.truncf %55 : vector<48x48xf32> to vector<48x48xbf16>
    %cst_25 = arith.constant dense<0.000000e+00> : vector<48x32xf32>
    %57 = tpu.matmul %56, %43, %cst_25 {dimension_numbers = #tpu.dot_dimension_numbers<[1], [0], [0], [1], [0, 0, 1, 1], [], []>} : vector<48x48xbf16>, vector<48x32xbf16>, vector<48x32xf32> -> vector<48x32xf32>
    %58 = arith.addf %40, %57 : vector<48x32xf32>
    %59 = vector.extract_strided_slice %39 {offsets = [0, 8], sizes = [48, 8], strides = [1, 1]} : vector<48x256xbf16> to vector<48x8xbf16>
    %60 = vector.extract_strided_slice %39 {offsets = [0, 40], sizes = [48, 8], strides = [1, 1]} : vector<48x256xbf16> to vector<48x8xbf16>
    %61 = vector.extract_strided_slice %39 {offsets = [0, 160], sizes = [48, 32], strides = [1, 1]} : vector<48x256xbf16> to vector<48x32xbf16>
    %cst_26 = arith.constant dense<0.000000e+00> : vector<48x48xf32>
    %62 = tpu.matmul %59, %60, %cst_26 {dimension_numbers = #tpu.dot_dimension_numbers<[1], [1], [0], [0], [0, 0, 1, 0], [], []>} : vector<48x8xbf16>, vector<48x8xbf16>, vector<48x48xf32> -> vector<48x48xf32>
    %63 = arith.addf %62, %4 : vector<48x48xf32>
    %cst_27 = arith.constant dense<0xFF800000> : vector<48xf32>
    %64 = vector.multi_reduction <maximumf>, %63, %cst_27 [1] : vector<48x48xf32> to vector<48xf32>
    %65 = vector.shape_cast %64 : vector<48xf32> to vector<48x1xf32>
    %66 = vector.broadcast %65 : vector<48x1xf32> to vector<48x48xf32>
    %67 = arith.subf %63, %66 : vector<48x48xf32>
    %68 = math.exp %67 : vector<48x48xf32>
    %cst_28 = arith.constant dense<0.000000e+00> : vector<48xf32>
    %69 = vector.multi_reduction <add>, %68, %cst_28 [1] : vector<48x48xf32> to vector<48xf32>
    %70 = vector.shape_cast %69 : vector<48xf32> to vector<48x1xf32>
    %71 = tpu.reciprocal %70 {approx = true} : vector<48x1xf32> -> vector<48x1xf32>
    %72 = vector.broadcast %71 : vector<48x1xf32> to vector<48x48xf32>
    %73 = arith.mulf %68, %72 : vector<48x48xf32>
    %74 = arith.truncf %73 : vector<48x48xf32> to vector<48x48xbf16>
    %cst_29 = arith.constant dense<0.000000e+00> : vector<48x32xf32>
    %75 = tpu.matmul %74, %61, %cst_29 {dimension_numbers = #tpu.dot_dimension_numbers<[1], [0], [0], [1], [0, 0, 1, 1], [], []>} : vector<48x48xbf16>, vector<48x32xbf16>, vector<48x32xf32> -> vector<48x32xf32>
    %76 = arith.addf %58, %75 : vector<48x32xf32>
    %77 = vector.extract_strided_slice %39 {offsets = [0, 16], sizes = [48, 8], strides = [1, 1]} : vector<48x256xbf16> to vector<48x8xbf16>
    %78 = vector.extract_strided_slice %39 {offsets = [0, 48], sizes = [48, 8], strides = [1, 1]} : vector<48x256xbf16> to vector<48x8xbf16>
    %79 = vector.extract_strided_slice %39 {offsets = [0, 192], sizes = [48, 32], strides = [1, 1]} : vector<48x256xbf16> to vector<48x32xbf16>
    %cst_30 = arith.constant dense<0.000000e+00> : vector<48x48xf32>
    %80 = tpu.matmul %77, %78, %cst_30 {dimension_numbers = #tpu.dot_dimension_numbers<[1], [1], [0], [0], [0, 0, 1, 0], [], []>} : vector<48x8xbf16>, vector<48x8xbf16>, vector<48x48xf32> -> vector<48x48xf32>
    %81 = arith.addf %80, %4 : vector<48x48xf32>
    %cst_31 = arith.constant dense<0xFF800000> : vector<48xf32>
    %82 = vector.multi_reduction <maximumf>, %81, %cst_31 [1] : vector<48x48xf32> to vector<48xf32>
    %83 = vector.shape_cast %82 : vector<48xf32> to vector<48x1xf32>
    %84 = vector.broadcast %83 : vector<48x1xf32> to vector<48x48xf32>
    %85 = arith.subf %81, %84 : vector<48x48xf32>
    %86 = math.exp %85 : vector<48x48xf32>
    %cst_32 = arith.constant dense<0.000000e+00> : vector<48xf32>
    %87 = vector.multi_reduction <add>, %86, %cst_32 [1] : vector<48x48xf32> to vector<48xf32>
    %88 = vector.shape_cast %87 : vector<48xf32> to vector<48x1xf32>
    %89 = tpu.reciprocal %88 {approx = true} : vector<48x1xf32> -> vector<48x1xf32>
    %90 = vector.broadcast %89 : vector<48x1xf32> to vector<48x48xf32>
    %91 = arith.mulf %86, %90 : vector<48x48xf32>
    %92 = arith.truncf %91 : vector<48x48xf32> to vector<48x48xbf16>
    %cst_33 = arith.constant dense<0.000000e+00> : vector<48x32xf32>
    %93 = tpu.matmul %92, %79, %cst_33 {dimension_numbers = #tpu.dot_dimension_numbers<[1], [0], [0], [1], [0, 0, 1, 1], [], []>} : vector<48x48xbf16>, vector<48x32xbf16>, vector<48x32xf32> -> vector<48x32xf32>
    %94 = arith.addf %76, %93 : vector<48x32xf32>
    %95 = vector.extract_strided_slice %39 {offsets = [0, 24], sizes = [48, 8], strides = [1, 1]} : vector<48x256xbf16> to vector<48x8xbf16>
    %96 = vector.extract_strided_slice %39 {offsets = [0, 56], sizes = [48, 8], strides = [1, 1]} : vector<48x256xbf16> to vector<48x8xbf16>
    %97 = vector.extract_strided_slice %39 {offsets = [0, 224], sizes = [48, 32], strides = [1, 1]} : vector<48x256xbf16> to vector<48x32xbf16>
    %cst_34 = arith.constant dense<0.000000e+00> : vector<48x48xf32>
    %98 = tpu.matmul %95, %96, %cst_34 {dimension_numbers = #tpu.dot_dimension_numbers<[1], [1], [0], [0], [0, 0, 1, 0], [], []>} : vector<48x8xbf16>, vector<48x8xbf16>, vector<48x48xf32> -> vector<48x48xf32>
    %99 = arith.addf %98, %4 : vector<48x48xf32>
    %cst_35 = arith.constant dense<0xFF800000> : vector<48xf32>
    %100 = vector.multi_reduction <maximumf>, %99, %cst_35 [1] : vector<48x48xf32> to vector<48xf32>
    %101 = vector.shape_cast %100 : vector<48xf32> to vector<48x1xf32>
    %102 = vector.broadcast %101 : vector<48x1xf32> to vector<48x48xf32>
    %103 = arith.subf %99, %102 : vector<48x48xf32>
    %104 = math.exp %103 : vector<48x48xf32>
    %cst_36 = arith.constant dense<0.000000e+00> : vector<48xf32>
    %105 = vector.multi_reduction <add>, %104, %cst_36 [1] : vector<48x48xf32> to vector<48xf32>
    %106 = vector.shape_cast %105 : vector<48xf32> to vector<48x1xf32>
    %107 = tpu.reciprocal %106 {approx = true} : vector<48x1xf32> -> vector<48x1xf32>
    %108 = vector.broadcast %107 : vector<48x1xf32> to vector<48x48xf32>
    %109 = arith.mulf %104, %108 : vector<48x48xf32>
    %110 = arith.truncf %109 : vector<48x48xf32> to vector<48x48xbf16>
    %cst_37 = arith.constant dense<0.000000e+00> : vector<48x32xf32>
    %111 = tpu.matmul %110, %97, %cst_37 {dimension_numbers = #tpu.dot_dimension_numbers<[1], [0], [0], [1], [0, 0, 1, 1], [], []>} : vector<48x48xbf16>, vector<48x32xbf16>, vector<48x32xf32> -> vector<48x32xf32>
    %112 = arith.addf %94, %111 : vector<48x32xf32>
    %113 = arith.addf %3, %112 : vector<48x32xf32>
    %c0_38 = arith.constant 0 : index
    %c0_39 = arith.constant 0 : index
    %c0_40 = arith.constant 0 : index
    %114 = vector.load %arg11[%c0_38, %c0_39, %c0_40] : memref<1x1x32xf32, #tpu.memory_space<vmem>>, vector<1x1x32xf32>
    %115 = vector.shape_cast %114 : vector<1x1x32xf32> to vector<1x32xf32>
    %116 = vector.broadcast %115 : vector<1x32xf32> to vector<48x32xf32>
    %117 = arith.addf %113, %116 : vector<48x32xf32>
    %c0_41 = arith.constant 0 : index
    %c0_42 = arith.constant 0 : index
    %c0_43 = arith.constant 0 : index
    %118 = vector.load %arg12[%c0_41, %c0_42, %c0_43] : memref<1x1x32xf32, #tpu.memory_space<vmem>>, vector<1x1x32xf32>
    %119 = vector.shape_cast %118 : vector<1x1x32xf32> to vector<1x32xf32>
    %c0_44 = arith.constant 0 : index
    %c0_45 = arith.constant 0 : index
    %c0_46 = arith.constant 0 : index
    %120 = vector.load %arg13[%c0_44, %c0_45, %c0_46] : memref<1x1x32xf32, #tpu.memory_space<vmem>>, vector<1x1x32xf32>
    %121 = vector.shape_cast %120 : vector<1x1x32xf32> to vector<1x32xf32>
    %cst_47 = arith.constant dense<0.000000e+00> : vector<48xf32>
    %122 = vector.multi_reduction <add>, %117, %cst_47 [1] : vector<48x32xf32> to vector<48xf32>
    %123 = vector.shape_cast %122 : vector<48xf32> to vector<48x1xf32>
    %cst_48 = arith.constant 3.200000e+01 : f32
    %124 = vector.broadcast %cst_48 : f32 to vector<48x1xf32>
    %125 = arith.divf %123, %124 : vector<48x1xf32>
    %126 = vector.broadcast %125 : vector<48x1xf32> to vector<48x32xf32>
    %127 = arith.subf %117, %126 : vector<48x32xf32>
    %128 = arith.mulf %127, %127 : vector<48x32xf32>
    %cst_49 = arith.constant dense<0.000000e+00> : vector<48xf32>
    %129 = vector.multi_reduction <add>, %128, %cst_49 [1] : vector<48x32xf32> to vector<48xf32>
    %130 = vector.shape_cast %129 : vector<48xf32> to vector<48x1xf32>
    %cst_50 = arith.constant 3.200000e+01 : f32
    %131 = vector.broadcast %cst_50 : f32 to vector<48x1xf32>
    %132 = arith.divf %130, %131 : vector<48x1xf32>
    %133 = vector.broadcast %125 : vector<48x1xf32> to vector<48x32xf32>
    %134 = arith.subf %117, %133 : vector<48x32xf32>
    %cst_51 = arith.constant 9.99999974E-6 : f32
    %135 = vector.broadcast %cst_51 : f32 to vector<48x1xf32>
    %136 = arith.addf %132, %135 : vector<48x1xf32>
    %137 = math.rsqrt %136 : vector<48x1xf32>
    %138 = vector.broadcast %137 : vector<48x1xf32> to vector<48x32xf32>
    %139 = arith.mulf %134, %138 : vector<48x32xf32>
    %140 = vector.broadcast %119 : vector<1x32xf32> to vector<48x32xf32>
    %141 = arith.mulf %139, %140 : vector<48x32xf32>
    %142 = vector.broadcast %121 : vector<1x32xf32> to vector<48x32xf32>
    %143 = arith.addf %141, %142 : vector<48x32xf32>
    %144 = arith.truncf %143 : vector<48x32xf32> to vector<48x32xbf16>
    %c0_52 = arith.constant 0 : index
    %c0_53 = arith.constant 0 : index
    %c0_54 = arith.constant 0 : index
    %145 = vector.load %arg14[%c0_52, %c0_53, %c0_54] : memref<1x32x128xbf16, #tpu.memory_space<vmem>>, vector<1x32x128xbf16>
    %146 = vector.shape_cast %145 : vector<1x32x128xbf16> to vector<32x128xbf16>
    %cst_55 = arith.constant dense<0.000000e+00> : vector<48x128xf32>
    %147 = tpu.matmul %144, %146, %cst_55 {dimension_numbers = #tpu.dot_dimension_numbers<[1], [0], [0], [1], [0, 0, 1, 1], [], []>} : vector<48x32xbf16>, vector<32x128xbf16>, vector<48x128xf32> -> vector<48x128xf32>
    %c0_56 = arith.constant 0 : index
    %c0_57 = arith.constant 0 : index
    %c0_58 = arith.constant 0 : index
    %148 = vector.load %arg15[%c0_56, %c0_57, %c0_58] : memref<1x1x128xf32, #tpu.memory_space<vmem>>, vector<1x1x128xf32>
    %149 = vector.shape_cast %148 : vector<1x1x128xf32> to vector<1x128xf32>
    %150 = vector.broadcast %149 : vector<1x128xf32> to vector<48x128xf32>
    %151 = arith.addf %147, %150 : vector<48x128xf32>
    %cst_59 = arith.constant 1.702000e+00 : f32
    %152 = vector.broadcast %cst_59 : f32 to vector<48x128xf32>
    %153 = arith.mulf %152, %151 : vector<48x128xf32>
    %154 = arith.negf %153 : vector<48x128xf32>
    %155 = math.exp %154 : vector<48x128xf32>
    %cst_60 = arith.constant 1.000000e+00 : f32
    %156 = vector.broadcast %cst_60 : f32 to vector<48x128xf32>
    %157 = arith.addf %156, %155 : vector<48x128xf32>
    %158 = arith.divf %156, %157 : vector<48x128xf32>
    %159 = arith.mulf %151, %158 : vector<48x128xf32>
    %160 = arith.truncf %159 : vector<48x128xf32> to vector<48x128xbf16>
    %c0_61 = arith.constant 0 : index
    %c0_62 = arith.constant 0 : index
    %c0_63 = arith.constant 0 : index
    %161 = vector.load %arg16[%c0_61, %c0_62, %c0_63] : memref<1x128x32xbf16, #tpu.memory_space<vmem>>, vector<1x128x32xbf16>
    %162 = vector.shape_cast %161 : vector<1x128x32xbf16> to vector<128x32xbf16>
    %cst_64 = arith.constant dense<0.000000e+00> : vector<48x32xf32>
    %163 = tpu.matmul %160, %162, %cst_64 {dimension_numbers = #tpu.dot_dimension_numbers<[1], [0], [0], [1], [0, 0, 1, 1], [], []>} : vector<48x128xbf16>, vector<128x32xbf16>, vector<48x32xf32> -> vector<48x32xf32>
    %c0_65 = arith.constant 0 : index
    %c0_66 = arith.constant 0 : index
    %c0_67 = arith.constant 0 : index
    %164 = vector.load %arg17[%c0_65, %c0_66, %c0_67] : memref<1x1x32xf32, #tpu.memory_space<vmem>>, vector<1x1x32xf32>
    %165 = vector.shape_cast %164 : vector<1x1x32xf32> to vector<1x32xf32>
    %166 = vector.broadcast %165 : vector<1x32xf32> to vector<48x32xf32>
    %167 = arith.addf %163, %166 : vector<48x32xf32>
    %168 = arith.addf %117, %167 : vector<48x32xf32>
    %c0_68 = arith.constant 0 : index
    %c0_69 = arith.constant 0 : index
    %169 = vector.load %arg18[%c0_68, %c0_69] : memref<48x32xf32, #tpu.memory_space<vmem>>, vector<48x32xf32>
    tpu.vector_store %arg18[%c0_68, %c0_69], %168 {strides = array<i32>} : memref<48x32xf32, #tpu.memory_space<vmem>>, vector<48x32xf32>,
    return
  }
  func.func @transform_0(%arg0: i32) -> (i32, i32) {
    %c0_i32 = arith.constant 0 : i32
    %c0_i32_0 = arith.constant 0 : i32
    %c0_i32_1 = arith.constant 0 : i32
    return %c0_i32, %c0_i32_0 : i32, i32
  }
  func.func @transform_1(%arg0: i32) -> (i32, i32) {
    %c0_i32 = arith.constant 0 : i32
    %c0_i32_0 = arith.constant 0 : i32
    %c0_i32_1 = arith.constant 0 : i32
    return %c0_i32, %c0_i32_0 : i32, i32
  }
  func.func @transform_2(%arg0: i32) -> (i32, i32) {
    %c0_i32 = arith.constant 0 : i32
    %c0_i32_0 = arith.constant 0 : i32
    %c0_i32_1 = arith.constant 0 : i32
    return %c0_i32, %c0_i32_0 : i32, i32
  }
  func.func @transform_3(%arg0: i32) -> (i32, i32) {
    %c0_i32 = arith.constant 0 : i32
    %c0_i32_0 = arith.constant 0 : i32
    %c0_i32_1 = arith.constant 0 : i32
    return %c0_i32, %c0_i32_0 : i32, i32
  }
  func.func @transform_4(%arg0: i32) -> (i32, i32) {
    %c0_i32 = arith.constant 0 : i32
    %c0_i32_0 = arith.constant 0 : i32
    %c0_i32_1 = arith.constant 0 : i32
    return %c0_i32, %c0_i32_0 : i32, i32
  }
  func.func @transform_5(%arg0: i32) -> (i32, i32) {
    %c0_i32 = arith.constant 0 : i32
    %c0_i32_0 = arith.constant 0 : i32
    %c0_i32_1 = arith.constant 0 : i32
    return %c0_i32, %c0_i32_0 : i32, i32
  }
  func.func @transform_6(%arg0: i32) -> (i32, i32, i32) {
    %c0_i32 = arith.constant 0 : i32
    %c0_i32_0 = arith.constant 0 : i32
    %c0_i32_1 = arith.constant 0 : i32
    return %arg0, %c0_i32, %c0_i32_0 : i32, i32, i32
  }
  func.func @transform_7(%arg0: i32) -> (i32, i32, i32) {
    %c0_i32 = arith.constant 0 : i32
    %c0_i32_0 = arith.constant 0 : i32
    %c0_i32_1 = arith.constant 0 : i32
    return %arg0, %c0_i32, %c0_i32_0 : i32, i32, i32
  }
  func.func @transform_8(%arg0: i32) -> (i32, i32, i32) {
    %c0_i32 = arith.constant 0 : i32
    %c0_i32_0 = arith.constant 0 : i32
    %c0_i32_1 = arith.constant 0 : i32
    return %arg0, %c0_i32, %c0_i32_0 : i32, i32, i32
  }
  func.func @transform_9(%arg0: i32) -> (i32, i32, i32) {
    %c0_i32 = arith.constant 0 : i32
    %c0_i32_0 = arith.constant 0 : i32
    %c0_i32_1 = arith.constant 0 : i32
    return %arg0, %c0_i32, %c0_i32_0 : i32, i32, i32
  }
  func.func @transform_10(%arg0: i32) -> (i32, i32, i32) {
    %c0_i32 = arith.constant 0 : i32
    %c0_i32_0 = arith.constant 0 : i32
    %c0_i32_1 = arith.constant 0 : i32
    return %arg0, %c0_i32, %c0_i32_0 : i32, i32, i32
  }
  func.func @transform_11(%arg0: i32) -> (i32, i32, i32) {
    %c0_i32 = arith.constant 0 : i32
    %c0_i32_0 = arith.constant 0 : i32
    %c0_i32_1 = arith.constant 0 : i32
    return %arg0, %c0_i32, %c0_i32_0 : i32, i32, i32
  }
  func.func @transform_12(%arg0: i32) -> (i32, i32, i32) {
    %c0_i32 = arith.constant 0 : i32
    %c0_i32_0 = arith.constant 0 : i32
    %c0_i32_1 = arith.constant 0 : i32
    return %arg0, %c0_i32, %c0_i32_0 : i32, i32, i32
  }
  func.func @transform_13(%arg0: i32) -> (i32, i32, i32) {
    %c0_i32 = arith.constant 0 : i32
    %c0_i32_0 = arith.constant 0 : i32
    %c0_i32_1 = arith.constant 0 : i32
    return %arg0, %c0_i32, %c0_i32_0 : i32, i32, i32
  }
  func.func @transform_14(%arg0: i32) -> (i32, i32, i32) {
    %c0_i32 = arith.constant 0 : i32
    %c0_i32_0 = arith.constant 0 : i32
    %c0_i32_1 = arith.constant 0 : i32
    return %arg0, %c0_i32, %c0_i32_0 : i32, i32, i32
  }
  func.func @transform_15(%arg0: i32) -> (i32, i32, i32) {
    %c0_i32 = arith.constant 0 : i32
    %c0_i32_0 = arith.constant 0 : i32
    %c0_i32_1 = arith.constant 0 : i32
    return %arg0, %c0_i32, %c0_i32_0 : i32, i32, i32
  }
  func.func @transform_16(%arg0: i32) -> (i32, i32, i32) {
    %c0_i32 = arith.constant 0 : i32
    %c0_i32_0 = arith.constant 0 : i32
    %c0_i32_1 = arith.constant 0 : i32
    return %arg0, %c0_i32, %c0_i32_0 : i32, i32, i32
  }
  func.func @transform_17(%arg0: i32) -> (i32, i32) {
    %c0_i32 = arith.constant 0 : i32
    %c0_i32_0 = arith.constant 0 : i32
    %c0_i32_1 = arith.constant 0 : i32
    return %c0_i32, %c0_i32_0 : i32, i32
  }
}

</mosaic_0001>

<bundles_post_ra>
// kernel: tpu_custom_call.1
= control target key start
LH: loop header
LB: loop body
LE: loop exit
PB: predicated region body
PF: predicated region fallthrough
CT: control target
= control target key end

     0   :  { %s3306_s24 = smov 0   ;;  %s4124_s0 = inlined_call_operand.vmem [shape: bf16[48,48], index: 0, kind: input, shape index: {}]   ;;  %s4125_s1 = inlined_call_operand.vmem [shape: bf16[48,32], index: 1, kind: input, shape index: {}]   ;;  %s4126_s2 = inlined_call_operand.vmem [shape: f32[48,32], index: 2, kind: input, shape index: {}]   ;;  %s4127_s3 = inlined_call_operand.vmem [shape: f32[1,32], index: 3, kind: input, shape index: {}]   ;;  %s4128_s4 = inlined_call_operand.vmem [shape: f32[1,32], index: 4, kind: input, shape index: {}]   ;;  %s4129_s5 = inlined_call_operand.vmem [shape: f32[48,48], index: 5, kind: input, shape index: {}]   ;;  %s4130_s6 = inlined_call_operand.vmem [shape: f32[2,1,32], index: 6, kind: input, shape index: {}]   ;;  %s4131_s7 = inlined_call_operand.vmem [shape: f32[2,1,32], index: 7, kind: input, shape index: {}]   ;;  %s4132_s8 = inlined_call_operand.vmem [shape: bf16[2,32,256], index: 8, kind: input, shape index: {}]   ;;  %s4133_s9 = inlined_call_operand.vmem [shape: f32[2,1,256], index: 9, kind: input, shape index: {}]   ;;  %s4134_s10 = inlined_call_operand.vmem [shape: f32[2,1,32], index: 10, kind: input, shape index: {}]   ;;  %s4135_s11 = inlined_call_operand.vmem [shape: f32[2,1,32], index: 11, kind: input, shape index: {}]   ;;  %s4136_s12 = inlined_call_operand.vmem [shape: f32[2,1,32], index: 12, kind: input, shape index: {}]   ;;  %s4137_s13 = inlined_call_operand.vmem [shape: bf16[2,32,128], index: 13, kind: input, shape index: {}]   ;;  %s4138_s14 = inlined_call_operand.vmem [shape: f32[2,1,128], index: 14, kind: input, shape index: {}]   ;;  %s4139_s15 = inlined_call_operand.vmem [shape: bf16[2,128,32], index: 15, kind: input, shape index: {}]   ;;  %s4140_s16 = inlined_call_operand.vmem [shape: f32[2,1,32], index: 16, kind: input, shape index: {}]   ;;  %s4141_s17 = inlined_call_operand.vmem [shape: f32[48,32], index: 17, kind: output, shape index: {}]  }
   0x1   :  { %4148 = sst [smem:[#allocation3_spill]] %s4124_s0 }
   0x2   :  { %4149 = sst [smem:[#allocation4_spill]] %s4125_s1 }
   0x3   :  { %4150 = sst [smem:[#allocation5_spill]] %s4129_s5 }
   0x4   :  { %4151 = sst [smem:[#allocation6_spill]] %s4130_s6 }
   0x5   :  { %4152 = sst [smem:[#allocation7_spill]] %s4131_s7 }
   0x6   :  { %4153 = sst [smem:[#allocation8_spill]] %s4132_s8 }
   0x7   :  { %4154 = sst [smem:[#allocation9_spill]] %s4141_s17 }
   0x8 LB: > { %4155 = sst [smem:[#allocation2_spill]] %s3200_s24  ;;  %s2621_s25 = sadd.s32 4294967295, %s3200_s24   ;;  %s3200_s24 = sphi %s3306_s24, %s27_s24  }
   0x9   : > { %p2624_p0 = scmp.ge.s32.totalorder %s3200_s24, 1  ;;  %p567_p1 = scmp.lt.s32.totalorder %s3200_s24, 3 }
   0xb   : > { %p568_p2 = pnand %p2624_p0, %p567_p1 }
   0xc   : > { %p649_p3 = scmp.lt.s32.totalorder (!%p568_p2), %s2621_s25, 1  ;;  %s4158_s8 = sld [smem:[#allocation8_spill]] (!%p568_p2) }
   0xd   : > { %571 = sbr.rel (%p568_p2) target bundleno = 3516 (0xdbc), region = 88  ;;  %p2632_p4 = scmp.ne.s32.totalorder (!%p568_p2), %s2621_s25, 0 }
  0x14   : > { %s3314_s26 = scalar_select %p649_p3, %s2621_s25, 1 }
  0x15   : > { %693 = sbr.rel (%p2632_p4) target bundleno = 584 (0x248), region = 92  ;;  %v3202_v1 = vmov (!%p2632_p4), 0.0   ;;  %vm3203_vm0 = vmmov (!%p2632_p4), 0   ;;  %vm745_vm1 = vcmask (!%p2632_p4), 392192   ;;  %v706_v7 = vld [vmem:[%s4126_s2] sm:$0xff] (!%p2632_p4)  ;;  %v708_v8 = vld [vmem:[%s4126_s2 + $0x10] sm:$0xff] (!%p2632_p4) }
  0x16   : > { %s2703_s19 = sshll.u32 %s3314_s26, 5  ;;  %s2627_s1 = sshll.u32 %s3314_s26, 1  ;;  %2776 = vmatprep.subr.bf16.mxu0 (!%p2632_p4), %v3202_v1  ;;  %2982 = vmatprep.subr.bf16.mxu1 (!%p2632_p4), %v3202_v1  ;;  %v707_v11 = vld [vmem:[%s4126_s2 + $0x8] sm:$0xff] (!%p2632_p4)  ;;  %v709_v12 = vld [vmem:[%s4126_s2 + $0x18] sm:$0xff] (!%p2632_p4)  ;;  %vm814_vm2 = vcmask (!%p2632_p4), 261120   ;;  %v710_v25 = vld [vmem:[%s4126_s2 + $0x20] sm:$0xff] (!%p2632_p4) }
  0x17   : > { %s3329_s22 = scalar_lea.vmem %s4158_s8, %s2703_s19  ;;  %s3334_s28 = scalar_lea.vmem %s4133_s9, %s2627_s1  ;;  %2782 = vmatprep.mubr.msk.bf16.mxu0 (!%p2632_p4), %vm3203_vm0, %v3202_v1  ;;  %2786 = vmatprep.mubr.msk.bf16.mxu1 (!%p2632_p4), %vm3203_vm0, %v3202_v1  ;;  %v711_v29 = vld [vmem:[%s4126_s2 + $0x28] sm:$0xff] (!%p2632_p4) }
  0x18   : > { %s672_s7 = scalar_lea.vmem %s4136_s12, %s3314_s26  ;;  %s2704_s20 = sshll.u32 %s3314_s26, 4 }
  0x19   : > { %s3352_s8 = scalar_lea.vmem %s4137_s13, %s2704_s20  ;;  %s2705_s5 = sshll.u32 %s3314_s26, 6 }
  0x1a   : > { %s3366_s18 = scalar_lea.vmem %s4139_s15, %s2705_s5  ;;  %s4159_s20 = sld [smem:[#allocation4_spill]] (!%p2632_p4) }
  0x1b   : > { %s4160_s5 = sld [smem:[#allocation3_spill]] (!%p2632_p4)  ;;  %s4161_s30 = sld [smem:[#allocation9_spill]] (!%p2632_p4) }
  0x20   : > { %v3010_v0 = vld [vmem:[%s4159_s20] sm:$0xff]   ;;  %v3011_v2 = vld [vmem:[%s4159_s20 + $0x8] sm:$0xff]   ;;  %v3012_v3 = vld [vmem:[%s4159_s20 + $0x10] sm:$0xff]  }
  0x21   : > { %2777 = vmatpush3.bf16.msra.mxu0 %v3010_v0  ;;  %2985 = vmatpush3.bf16.msra.mxu1 %v3010_v0  ;;  %v3013_v4 = vld [vmem:[%s4160_s5] sm:$0xff]   ;;  %v3014_v5 = vld [vmem:[%s4160_s5 + $0x8] sm:$0xff]   ;;  %v3015_v6 = vld [vmem:[%s4160_s5 + $0x10] sm:$0xff]  }
  0x22   : > { %2778 = vmatprep.subr.bf16.mxu0 %v3202_v1  ;;  %2983 = vmatprep.subr.bf16.mxu1 %v3202_v1 }
  0x25   : > { %2779 = vmatpush3.bf16.msra.mxu0 %v3011_v2  ;;  %2986 = vmatpush3.bf16.msra.mxu1 %v3011_v2 }
  0x26   : > { %2780 = vmatprep.subr.bf16.mxu0 %v3202_v1  ;;  %2984 = vmatprep.subr.bf16.mxu1 %v3202_v1 }
  0x29   : > { %2781 = vmatpush3.bf16.msra.mxu0 %v3012_v3  ;;  %2987 = vmatpush3.bf16.msra.mxu1 %v3012_v3 }
  0x2c   : > { %2783 = vmatmul.mubr.msk.bf16.vlgmr.msra.gmra.mrb[0].mxu0 %vm745_vm1, %v3013_v4  ;;  %2787 = vmatmul.mubr.msk.bf16.vlgmr.msra.gmra.mrb[0].mxu1 %vm745_vm1, %v3014_v5 }
  0x2d   : > { %2790 = vmatprep.mubr.msk.bf16.mxu1 %vm3203_vm0, %v3202_v1 }
  0x34   : > { %2791 = vmatmul.mubr.msk.bf16.gmra.mrb[4].mxu1 %vm745_vm1, %v3015_v6 }
  0xff   : > { %v789_v9 = vpop.f32.mrb[0].mxu0  ;;  %v797_v10 = vpop.f32.mrb[0].mxu1 }
 0x100   : > { %v790_v13 = vadd.f32 %v789_v9, %v706_v7  ;;  %v798_v14 = vadd.f32 %v797_v10, %v708_v8  ;;  %v2784_v15 = vpop.f32.mrb[1].mxu0  ;;  %v2788_v16 = vpop.f32.mrb[1].mxu1 }
 0x101   : > { %v792_v17 = vpop.f32.mrb[2].mxu0  ;;  %v800_v18 = vpop.f32.mrb[2].mxu1 }
 0x102   : > { %v793_v19 = vadd.f32 %v792_v17, %v707_v11  ;;  %v801_v20 = vadd.f32 %v800_v18, %v709_v12  ;;  %v2785_v21 = vpop.f32.mrb[3].mxu0  ;;  %v2789_v22 = vpop.f32.mrb[3].mxu1  ;;  %v821_v23 = vsel %vm814_vm2, %v798_v14, 0.0  ;;  %v815_v24 = vsel %vm814_vm2, %v790_v13, 0.0 }
 0x103   : > { %822 = vadd.xlane.f32.xlu1 %v821_v23  ;;  %816 = vadd.xlane.f32.xlu0 %v815_v24  ;;  %v2642_v21 = vld [vmem:[%s4127_s3] ss:$0 sm:$0xff] }
 0x104   : > { %v824_v26 = vsel %vm814_vm2, %v801_v20, 0.0  ;;  %v818_v27 = vsel %vm814_vm2, %v793_v19, 0.0  ;;  %v2643_v24 = vld [vmem:[%s4128_s4] ss:$0 sm:$0xff] }
 0x107   : > { %825 = vadd.xlane.f32.xlu1 %v824_v26  ;;  %v805_v28 = vpop.f32.mrb[4].mxu1  ;;  %819 = vadd.xlane.f32.xlu0 %v818_v27 }
 0x108   : > { %v806_v30 = vadd.f32 %v805_v28, %v710_v25  ;;  %v2792_v31 = vpop.f32.mrb[5].mxu1 }
 0x109   : > { %v808_v32 = vpop.f32.mrb[6].mxu1 }
 0x10a   : > { %v809_v33 = vadd.f32 %v808_v32, %v711_v29  ;;  %v2793_v34 = vpop.f32.mrb[7].mxu1  ;;  %v827_v35 = vsel %vm814_vm2, %v806_v30, 0.0 }
 0x10b   : > { %828 = vadd.xlane.f32.xlu0 %v827_v35 }
 0x10c   : > { %v830_v36 = vsel %vm814_vm2, %v809_v33, 0.0 }
 0x10d   : > { %831 = vadd.xlane.f32.xlu1 %v830_v36 }
 0x190   : > { %v823_v37 = vpop.xlane.xlu1 %822  ;;  %v817_v38 = vpop.xlane.xlu0 %816 }
 0x191   : > { %v836_v39 = vmul.f32 0.03125, %v823_v37  ;;  %v834_v40 = vmul.f32 0.03125, %v817_v38 }
 0x193   : > { %v3410_v41 = vsub.f32 %v798_v14, %v836_v39  ;;  %v840_v42 = vsub.f32 %v790_v13, %v834_v40 }
 0x194   : > { %v826_v43 = vpop.xlane.xlu1 %825  ;;  %v820_v44 = vpop.xlane.xlu0 %819 }
 0x195   : > { %v837_v45 = vmul.f32 0.03125, %v826_v43  ;;  %v835_v46 = vmul.f32 0.03125, %v820_v44  ;;  %v846_v47 = vmul.f32 %v840_v42, %v840_v42  ;;  %v848_v48 = vmul.f32 %v3410_v41, %v3410_v41 }
 0x197   : > { %v3414_v49 = vsub.f32 %v801_v20, %v837_v45  ;;  %v841_v50 = vsub.f32 %v793_v19, %v835_v46  ;;  %v852_v51 = vsel %vm814_vm2, %v846_v47, 0.0  ;;  %v858_v56 = vsel %vm814_vm2, %v848_v48, 0.0 }
 0x198   : > { %853 = vadd.xlane.f32.xlu0 %v852_v51  ;;  %v829_v52 = vpop.xlane.xlu0 %828 }
 0x199   : > { %v838_v53 = vmul.f32 0.03125, %v829_v52  ;;  %v847_v54 = vmul.f32 %v841_v50, %v841_v50  ;;  %v849_v60 = vmul.f32 %v3414_v49, %v3414_v49 }
 0x19a   : > { %v832_v55 = vpop.xlane.xlu1 %831 }
 0x19b   : > { %v844_v57 = vsub.f32 %v806_v30, %v838_v53  ;;  %v839_v58 = vmul.f32 0.03125, %v832_v55  ;;  %v855_v59 = vsel %vm814_vm2, %v847_v54, 0.0  ;;  %v861_v63 = vsel %vm814_vm2, %v849_v60, 0.0 }
 0x19c   : > { %859 = vadd.xlane.f32.xlu0 %v858_v56  ;;  %856 = vadd.xlane.f32.xlu1 %v855_v59 }
 0x19d   : > { %v845_v61 = vsub.f32 %v809_v33, %v839_v58  ;;  %v850_v62 = vmul.f32 %v844_v57, %v844_v57 }
 0x19f   : > { %v864_v0 = vsel %vm814_vm2, %v850_v62, 0.0  ;;  %v851_v1 = vmul.f32 %v845_v61, %v845_v61 }
 0x1a0   : > { %862 = vadd.xlane.f32.xlu1 %v861_v63  ;;  %865 = vadd.xlane.f32.xlu0 %v864_v0 }
 0x1a1   : > { %v867_v2 = vsel %vm814_vm2, %v851_v1, 0.0 }
 0x1a4   : > { %868 = vadd.xlane.f32.xlu1 %v867_v2 }
 0x225   : > { %v854_v3 = vpop.xlane.xlu0 %853 }
 0x226   : > { %v870_v4 = vmul.f32 0.03125, %v854_v3 }
 0x228   : > { %v876_v5 = vadd.f32 1e-05, %v870_v4 }
 0x229   : > { %v857_v6 = vpop.xlane.xlu1 %856  ;;  %v860_v7 = vpop.xlane.xlu0 %859 }
 0x22a   : > { %3016 = vrsqrt.f32 %v876_v5  ;;  %v871_v8 = vmul.f32 0.03125, %v857_v6  ;;  %v872_v9 = vmul.f32 0.03125, %v860_v7 }
 0x22c   : > { %v877_v10 = vadd.f32 1e-05, %v871_v8  ;;  %v878_v11 = vadd.f32 1e-05, %v872_v9 }
 0x22d   : > { %v863_v12 = vpop.xlane.xlu1 %862  ;;  %v866_v13 = vpop.xlane.xlu0 %865 }
 0x22e   : > { %3018 = vrsqrt.f32 %v877_v10  ;;  %v873_v14 = vmul.f32 0.03125, %v863_v12  ;;  %v874_v15 = vmul.f32 0.03125, %v866_v13 }
 0x22f   : > { %3020 = vrsqrt.f32 %v878_v11 }
 0x230   : > { %v879_v16 = vadd.f32 1e-05, %v873_v14  ;;  %v880_v17 = vadd.f32 1e-05, %v874_v15 }
 0x231   : > { %v869_v18 = vpop.xlane.xlu1 %868 }
 0x232   : > { %3022 = vrsqrt.f32 %v879_v16  ;;  %v875_v19 = vmul.f32 0.03125, %v869_v18 }
 0x233   : > { %3024 = vrsqrt.f32 %v880_v17 }
 0x234   : > { %v3017_v20 = vpop.eup %3016  ;;  %v881_v22 = vadd.f32 1e-05, %v875_v19 }
 0x235   : > { %v888_v23 = vmul.f32 %v3017_v20, %v840_v42 }
 0x236   : > { %3026 = vrsqrt.f32 %v881_v22 }
 0x237   : > { %v900_v25 = vmul.f32 %v2642_v21, %v888_v23 }
 0x238   : > { %v3019_v26 = vpop.eup %3018 }
 0x239   : > { %v3021_v27 = vpop.eup %3020  ;;  %v912_v28 = vadd.f32 %v2643_v24, %v900_v25  ;;  %v889_v29 = vmul.f32 %v3019_v26, %v841_v50 }
 0x23a   : > { %v890_v30 = vmul.f32 %v3021_v27, %v3410_v41 }
 0x23b   : > { %918 = vst.msk [vmem:[%s4161_s30] sm:$0xff] %vm814_vm2, %v912_v28  ;;  %v901_v31 = vmul.f32 %v2642_v21, %v889_v29 }
 0x23c   : > { %v3023_v32 = vpop.eup %3022  ;;  %v902_v33 = vmul.f32 %v2642_v21, %v890_v30 }
 0x23d   : > { %v3025_v34 = vpop.eup %3024  ;;  %v913_v35 = vadd.f32 %v2643_v24, %v901_v31  ;;  %v891_v36 = vmul.f32 %v3023_v32, %v3414_v49 }
 0x23e   : > { %v914_v37 = vadd.f32 %v2643_v24, %v902_v33  ;;  %v892_v38 = vmul.f32 %v3025_v34, %v844_v57 }
 0x23f   : > { %919 = vst.msk [vmem:[%s4161_s30 + $0x8] sm:$0xff] %vm814_vm2, %v913_v35  ;;  %v903_v39 = vmul.f32 %v2642_v21, %v891_v36 }
 0x240   : > { %v3027_v40 = vpop.eup %3026  ;;  %920 = vst.msk [vmem:[%s4161_s30 + $0x10] sm:$0xff] %vm814_vm2, %v914_v37  ;;  %v904_v41 = vmul.f32 %v2642_v21, %v892_v38 }
 0x241   : > { %v915_v42 = vadd.f32 %v2643_v24, %v903_v39  ;;  %v893_v43 = vmul.f32 %v3027_v40, %v845_v61 }
 0x242   : > { %v916_v44 = vadd.f32 %v2643_v24, %v904_v41 }
 0x243   : > { %921 = vst.msk [vmem:[%s4161_s30 + $0x18] sm:$0xff] %vm814_vm2, %v915_v42  ;;  %v905_v45 = vmul.f32 %v2642_v21, %v893_v43 }
 0x244   : > { %922 = vst.msk [vmem:[%s4161_s30 + $0x20] sm:$0xff] %vm814_vm2, %v916_v44 }
 0x245   : > { %v917_v46 = vadd.f32 %v2643_v24, %v905_v45 }
 0x247   : > { %923 = vst.msk [vmem:[%s4161_s30 + $0x28] sm:$0xff] %vm814_vm2, %v917_v46 }
 0x248 PF: > { %s4162_s25 = sld [smem:[#allocation9_spill]]  ;;  %vm938_vm3 = vcmask 261120   ;;  %v3028_v25 = vld [vmem:[%s3329_s22 + $0x4] ss:$8 sps:$4 sm:$0xff]   ;;  %v3030_v26 = vld [vmem:[%s3329_s22] ss:$8 sps:$4 sm:$0xff]  }
 0x249   : > { %1090 = vmatprep.subr.bf16.mxu1 %v3028_v25  ;;  %v3031_v27 = vld [vmem:[%s3329_s22 + $0x14] ss:$8 sps:$4 sm:$0xff]   ;;  %v3033_v28 = vld [vmem:[%s3329_s22 + $0x10] ss:$8 sps:$4 sm:$0xff]   ;;  %v3204_v29 = vmov 0   ;;  %s4163_s6 = sld [smem:[#allocation6_spill]] }
 0x24a   : > { %1091 = vmatpush1.bf16.msra.mxu1 %v3030_v26  ;;  %1122 = vmatprep.mubr.bf16.mxu1 %v3204_v29  ;;  %s4165_s23 = sld [smem:[#allocation7_spill]]  ;;  %s3206_s24 = smov 88   ;;  %vm3207_vm4 = vmmov 0   ;;  %vm1168_vm5 = vcmask 64512   ;;  %vm1244_vm6 = vcmask 392192  }
 0x24b   : > { %1092 = vmatprep.subr.bf16.mxu1 %v3031_v27  ;;  %s4167_s21 = sld [smem:[#allocation5_spill]]  ;;  %s3210_s19 = smov 80  }
 0x24c   : > { %s3211_s22 = smov 112   ;;  %s3212_s27 = smov 104  }
 0x24d   : > { %s3215_s29 = smov 32  }
 0x24e   : > { %v924_v47 = vld [vmem:[%s4162_s25] sm:$0xff]  ;;  %v926_v48 = vld [vmem:[%s4162_s25 + $0x10] sm:$0xff]  ;;  %v925_v49 = vld [vmem:[%s4162_s25 + $0x8] sm:$0xff]  ;;  %1093 = vmatpush1.bf16.msra.mxu1 %v3033_v28 }
 0x24f   : > { %v939_v50 = vsel %vm938_vm3, %v924_v47, 0.0  ;;  %v945_v51 = vsel %vm938_vm3, %v926_v48, 0.0  ;;  %v927_v52 = vld [vmem:[%s4162_s25 + $0x18] sm:$0xff]  ;;  %v928_v53 = vld [vmem:[%s4162_s25 + $0x20] sm:$0xff]  ;;  %v929_v54 = vld [vmem:[%s4162_s25 + $0x28] sm:$0xff]  ;;  %v942_v55 = vsel %vm938_vm3, %v925_v49, 0.0  ;;  %s4164_s1 = scalar_lea.vmem %s4163_s6, %s3314_s26 }
 0x250   : > { %940 = vadd.xlane.f32.xlu0 %v939_v50  ;;  %946 = vadd.xlane.f32.xlu1 %v945_v51  ;;  %v948_v56 = vsel %vm938_vm3, %v927_v52, 0.0  ;;  %v951_v57 = vsel %vm938_vm3, %v928_v53, 0.0  ;;  %v954_v58 = vsel %vm938_vm3, %v929_v54, 0.0  ;;  %v2644_v50 = vld [vmem:[%s4164_s1] ss:$0 sm:$0xff]  ;;  %s4166_s30 = scalar_lea.vmem %s4165_s23, %s3314_s26  ;;  %s3213_s6 = smov 72  }
 0x251   : > { %s3214_s1 = smov 64  }
 0x254   : > { %943 = vadd.xlane.f32.xlu0 %v942_v55  ;;  %949 = vadd.xlane.f32.xlu1 %v948_v56  ;;  %v2645_v55 = vld [vmem:[%s4166_s30] ss:$0 sm:$0xff]  ;;  %s4168_s30 = scalar_lea.vmem %s4134_s10, %s3314_s26 }
 0x258   : > { %952 = vadd.xlane.f32.xlu0 %v951_v57  ;;  %955 = vadd.xlane.f32.xlu1 %v954_v58 }
 0x2dd   : > { %v941_v59 = vpop.xlane.xlu0 %940  ;;  %v947_v60 = vpop.xlane.xlu1 %946 }
 0x2de   : > { %v958_v61 = vmul.f32 0.03125, %v941_v59  ;;  %v960_v62 = vmul.f32 0.03125, %v947_v60 }
 0x2e0   : > { %v3480_v63 = vsub.f32 %v924_v47, %v958_v61  ;;  %v3482_v0 = vsub.f32 %v926_v48, %v960_v62 }
 0x2e1   : > { %v944_v1 = vpop.xlane.xlu0 %943  ;;  %v950_v2 = vpop.xlane.xlu1 %949 }
 0x2e2   : > { %v959_v3 = vmul.f32 0.03125, %v944_v1  ;;  %v961_v4 = vmul.f32 0.03125, %v950_v2  ;;  %v970_v5 = vmul.f32 %v3480_v63, %v3480_v63  ;;  %v972_v6 = vmul.f32 %v3482_v0, %v3482_v0 }
 0x2e4   : > { %v965_v7 = vsub.f32 %v925_v49, %v959_v3  ;;  %v3488_v8 = vsub.f32 %v927_v52, %v961_v4  ;;  %v976_v9 = vsel %vm938_vm3, %v970_v5, 0.0  ;;  %v982_v12 = vsel %vm938_vm3, %v972_v6, 0.0 }
 0x2e5   : > { %977 = vadd.xlane.f32.xlu0 %v976_v9  ;;  %v953_v10 = vpop.xlane.xlu0 %952  ;;  %v956_v11 = vpop.xlane.xlu1 %955 }
 0x2e6   : > { %v962_v13 = vmul.f32 0.03125, %v953_v10  ;;  %v963_v14 = vmul.f32 0.03125, %v956_v11  ;;  %v971_v15 = vmul.f32 %v965_v7, %v965_v7  ;;  %v973_v16 = vmul.f32 %v3488_v8, %v3488_v8 }
 0x2e8   : > { %v3494_v17 = vsub.f32 %v928_v53, %v962_v13  ;;  %v3496_v18 = vsub.f32 %v929_v54, %v963_v14  ;;  %v979_v19 = vsel %vm938_vm3, %v971_v15, 0.0  ;;  %v985_v20 = vsel %vm938_vm3, %v973_v16, 0.0 }
 0x2e9   : > { %983 = vadd.xlane.f32.xlu0 %v982_v12  ;;  %980 = vadd.xlane.f32.xlu1 %v979_v19  ;;  %v1051_v13 = vlaneseq  ;;  %v3205_v15 = vmov 0.0  }
 0x2ea   : > { %v974_v21 = vmul.f32 %v3494_v17, %v3494_v17  ;;  %v975_v22 = vmul.f32 %v3496_v18, %v3496_v18  ;;  %2812 = vmatprep.subr.bf16.mxu0 %v3205_v15  ;;  %2794 = vmatprep.subr.bf16.mxu1 %v3205_v15 }
 0x2eb   : > { %v1052_v14 = vshrl.u32 %v1051_v13, 7  ;;  %2818 = vmatprep.mubr.msk.bf16.mxu0 %vm3207_vm4, %v3205_v15 }
 0x2ec   : > { %v988_v23 = vsel %vm938_vm3, %v974_v21, 0.0  ;;  %v991_v24 = vsel %vm938_vm3, %v975_v22, 0.0 }
 0x2ed   : > { %986 = vadd.xlane.f32.xlu1 %v985_v20  ;;  %989 = vadd.xlane.f32.xlu0 %v988_v23  ;;  %v1053_v16 = vsub.s32 0, %v1052_v14 }
 0x2f1   : > { %992 = vadd.xlane.f32.xlu1 %v991_v24 }
 0x372   : > { %v978_v30 = vpop.xlane.xlu0 %977 }
 0x373   : > { %v994_v31 = vmul.f32 0.03125, %v978_v30 }
 0x375   : > { %v1000_v32 = vadd.f32 1e-05, %v994_v31 }
 0x376   : > { %v981_v33 = vpop.xlane.xlu1 %980  ;;  %v984_v34 = vpop.xlane.xlu0 %983 }
 0x377   : > { %3044 = vrsqrt.f32 %v1000_v32  ;;  %v995_v35 = vmul.f32 0.03125, %v981_v33  ;;  %v996_v36 = vmul.f32 0.03125, %v984_v34 }
 0x379   : > { %v1001_v37 = vadd.f32 1e-05, %v995_v35  ;;  %v1002_v38 = vadd.f32 1e-05, %v996_v36 }
 0x37a   : > { %v987_v39 = vpop.xlane.xlu1 %986  ;;  %v990_v40 = vpop.xlane.xlu0 %989 }
 0x37b   : > { %3046 = vrsqrt.f32 %v1001_v37  ;;  %v997_v41 = vmul.f32 0.03125, %v987_v39  ;;  %v998_v43 = vmul.f32 0.03125, %v990_v40 }
 0x37c   : > { %3048 = vrsqrt.f32 %v1002_v38 }
 0x37d   : > { %v1003_v42 = vadd.f32 1e-05, %v997_v41  ;;  %v1004_v47 = vadd.f32 1e-05, %v998_v43 }
 0x37e   : > { %v993_v44 = vpop.xlane.xlu1 %992 }
 0x37f   : > { %3050 = vrsqrt.f32 %v1003_v42  ;;  %v999_v45 = vmul.f32 0.03125, %v993_v44 }
 0x381   : > { %v3045_v46 = vpop.eup %3044  ;;  %v1005_v48 = vadd.f32 1e-05, %v999_v45 }
 0x382   : > { %v1012_v49 = vmul.f32 %v3045_v46, %v3480_v63 }
 0x383   : > { %3052 = vrsqrt.f32 %v1005_v48 }
 0x384   : > { %3054 = vrsqrt.f32 %v1004_v47  ;;  %v1024_v53 = vmul.f32 %v2644_v50, %v1012_v49 }
 0x385   : > { %v3047_v51 = vpop.eup %3046 }
 0x386   : > { %v1013_v52 = vmul.f32 %v3047_v51, %v965_v7  ;;  %v3049_v54 = vpop.eup %3048  ;;  %v1036_v60 = vadd.f32 %v2645_v55, %v1024_v53 }
 0x387   : > { %v1014_v58 = vmul.f32 %v3049_v54, %v3482_v0 }
 0x388   : > { %v1025_v56 = vmul.f32 %v2644_v50, %v1013_v52 }
 0x389   : > { %v3051_v57 = vpop.eup %3050  ;;  %v1026_v2 = vmul.f32 %v2644_v50, %v1014_v58 }
 0x38a   : > { %v1015_v59 = vmul.f32 %v3051_v57, %v3488_v8  ;;  %v1037_v61 = vadd.f32 %v2645_v55, %v1025_v56 }
 0x38b   : > { %v1038_v7 = vadd.f32 %v2645_v55, %v1026_v2 }
 0x38c   : > { %v1042_v62 = vpack.c.bf16 %v1037_v61, %v1036_v60  ;;  %v1027_v63 = vmul.f32 %v2644_v50, %v1015_v59  ;;  %v3577_v60 = vld [vmem:[%s4167_s21] sm:$0xff] }
 0x38d   : > { %v3053_v1 = vpop.eup %3052 }
 0x38e   : > { %2650 = vmatmul.mubr.msk.bf16.vlgmr.msra.gmra.mrb[0].mxu1 %vm938_vm3, %v1042_v62  ;;  %v3055_v3 = vpop.eup %3054  ;;  %v1017_v4 = vmul.f32 %v3053_v1, %v3496_v18  ;;  %v1039_v5 = vadd.f32 %v2645_v55, %v1027_v63  ;;  %v1057_v18 = vsub.s32 1, %v1052_v14  ;;  %v3582_v62 = vld [vmem:[%s4167_s21 + $0x8] sm:$0xff] }
 0x38f   : > { %1132 = vmatprep.mubr.bf16.mxu1 %v3204_v29  ;;  %v1016_v6 = vmul.f32 %v3055_v3, %v3494_v17  ;;  %v1049_v17 = vld [vmem:[%s3334_s28] sm:$0x3]  ;;  %s3208_s28 = smov 120  }
 0x390   : > { %v1043_v0 = vpack.c.bf16 %v1039_v5, %v1038_v7  ;;  %v1029_v9 = vmul.f32 %v2644_v50, %v1017_v4  ;;  %v1054_v19 = vrot.slane %v1049_v17, %v1053_v16  ;;  %v1058_v21 = vrot.slane %v1049_v17, %v1057_v18  ;;  %v3591_v7 = vld [vmem:[%s4167_s21 + $0x10] sm:$0xff]  ;;  %v3604_v16 = vld [vmem:[%s4167_s21 + $0x20] sm:$0xff] }
 0x391   : > { %v1028_v8 = vmul.f32 %v2644_v50, %v1016_v6 }
 0x392   : > { %v1041_v10 = vadd.f32 %v2645_v55, %v1029_v9  ;;  %v3596_v9 = vld [vmem:[%s4167_s21 + $0x18] sm:$0xff] }
 0x393   : > { %v1040_v11 = vadd.f32 %v2645_v55, %v1028_v8 }
 0x395   : > { %v1044_v12 = vpack.c.bf16 %v1041_v10, %v1040_v11 }
 0x396   : > { %2651 = vmatmul.mubr.msk.bf16.gmra.mrb[4].mxu1 %vm938_vm3, %v1043_v0 }
 0x397   : > { %1142 = vmatprep.mubr.bf16.mxu1 %v3204_v29 }
 0x39e   : > { %2652 = vmatmul.mubr.msk.bf16.gmra.mrb[8].mxu1 %vm938_vm3, %v1044_v12 }
 0x39f   : > { %2800 = vmatprep.mubr.msk.bf16.mxu1 %vm3207_vm4, %v3205_v15 }
 0x461   : > { %v1124_v20 = vpop.f32.mrb[0].mxu1 }
 0x462   : > { %v1126_v22 = vpop.f32.mrb[1].mxu1  ;;  %v1125_v24 = vadd.f32 %v1124_v20, %v1054_v19 }
 0x463   : > { %v1128_v23 = vpop.f32.mrb[2].mxu1  ;;  %v1127_v27 = vadd.f32 %v1126_v22, %v1058_v21 }
 0x464   : > { %v1129_v25 = vadd.f32 %v1128_v23, %v1054_v19  ;;  %v1130_v26 = vpop.f32.mrb[3].mxu1 }
 0x465   : > { %v1131_v28 = vadd.f32 %v1130_v26, %v1058_v21 }
 0x466   : > { %v3531_v29 = vpack.c.bf16 %v1129_v25, %v1125_v24  ;;  %v3616_v24 = vld [vmem:[%s4167_s21 + $0x28] sm:$0xff] }
 0x467   : > { %v3533_v30 = vpack.c.bf16 %v1131_v28, %v1127_v27 }
 0x468   : > { %1320 = vrot.lane.b32.xlu0 %v3531_v29, %s3206_s24 }
 0x469   : > { %v1134_v31 = vpop.f32.mrb[4].mxu1 }
 0x46a   : > { %v1136_v32 = vpop.f32.mrb[5].mxu1  ;;  %v1135_v34 = vadd.f32 %v1134_v31, %v1054_v19 }
 0x46b   : > { %v1138_v33 = vpop.f32.mrb[6].mxu1  ;;  %v1137_v37 = vadd.f32 %v1136_v32, %v1058_v21 }
 0x46c   : > { %v1139_v35 = vadd.f32 %v1138_v33, %v1054_v19  ;;  %v1140_v36 = vpop.f32.mrb[7].mxu1 }
 0x46d   : > { %v1141_v38 = vadd.f32 %v1140_v36, %v1058_v21 }
 0x46e   : > { %v3536_v39 = vpack.c.bf16 %v1139_v35, %v1135_v34 }
 0x46f   : > { %v3538_v40 = vpack.c.bf16 %v1141_v38, %v1137_v37 }
 0x470   : > { %1316 = vrot.lane.b32.xlu0 %v3536_v39, %s3208_s28  ;;  %1322 = vrot.lane.b32.xlu1 %v3536_v39, %s3206_s24 }
 0x471   : > { %v1144_v41 = vpop.f32.mrb[8].mxu1 }
 0x472   : > { %v1146_v42 = vpop.f32.mrb[9].mxu1  ;;  %v1145_v44 = vadd.f32 %v1144_v41, %v1054_v19 }
 0x473   : > { %v1148_v43 = vpop.f32.mrb[10].mxu1  ;;  %v1147_v47 = vadd.f32 %v1146_v42, %v1058_v21 }
 0x474   : > { %v1149_v45 = vadd.f32 %v1148_v43, %v1054_v19  ;;  %v1150_v46 = vpop.f32.mrb[11].mxu1 }
 0x475   : > { %v1151_v48 = vadd.f32 %v1150_v46, %v1058_v21 }
 0x476   : > { %v3546_v49 = vpack.c.bf16 %v1149_v45, %v1145_v44 }
 0x477   : > { %v3548_v50 = vpack.c.bf16 %v1151_v48, %v1147_v47 }
 0x478   : > { %1324 = vrot.lane.b32.xlu1 %v3546_v49, %s3206_s24  ;;  %s3209_s24 = smov 96  }
 0x47c   : > { %1314 = vrot.lane.b32.xlu1 %v3531_v29, %s3208_s28 }
 0x480   : > { %1318 = vrot.lane.b32.xlu1 %v3546_v49, %s3208_s28  ;;  %s4169_s28 = scalar_lea.vmem %s4135_s11, %s3314_s26 }
 0x4da   : > { %v1321_v51 = vpop.permute.xlu0 %1320 }
 0x4db   : > { %v1336_v52 = vsel %vm1168_vm5, %v1321_v51, 0 }
 0x4dc   : > { %2813 = vmatpush3.bf16.xpose.msra.mxu0 %v1336_v52 }
 0x4dd   : > { %2814 = vmatprep.subr.bf16.mxu0 %v3205_v15 }
 0x4e2   : > { %v1323_v53 = vpop.permute.xlu1 %1322  ;;  %v1317_v58 = vpop.permute.xlu0 %1316 }
 0x4e3   : > { %v1339_v54 = vsel %vm1168_vm5, %v1323_v53, 0 }
 0x4e4   : > { %2815 = vmatpush3.bf16.xpose.msra.mxu0 %v1339_v54 }
 0x4e5   : > { %2816 = vmatprep.subr.bf16.mxu0 %v3205_v15 }
 0x4ea   : > { %v1325_v55 = vpop.permute.xlu1 %1324 }
 0x4eb   : > { %v1342_v56 = vsel %vm1168_vm5, %v1325_v55, 0 }
 0x4ec   : > { %2817 = vmatpush3.bf16.xpose.msra.mxu0 %v1342_v56 }
 0x4ed   : > { %2848 = vmatprep.subr.bf16.mxu0 %v3205_v15 }
 0x4ee   : > { %v1315_v57 = vpop.permute.xlu1 %1314 }
 0x4f2   : > { %v1319_v59 = vpop.permute.xlu1 %1318 }
 0x4f3   : > { %2819 = vmatmul.mubr.msk.bf16.vlgmr.msra.gmra.mrb[0].mxu0 %vm1168_vm5, %v1315_v57 }
 0x4f4   : > { %2849 = vmatpush3.bf16.msra.mxu0 %v3533_v30  ;;  %2822 = vmatprep.mubr.msk.bf16.mxu0 %vm3207_vm4, %v3205_v15 }
 0x4f5   : > { %2850 = vmatprep.subr.bf16.mxu0 %v3205_v15 }
 0x4f8   : > { %2851 = vmatpush3.bf16.msra.mxu0 %v3538_v40 }
 0x4f9   : > { %2852 = vmatprep.subr.bf16.mxu0 %v3205_v15 }
 0x4fb   : > { %2823 = vmatmul.mubr.msk.bf16.gmra.mrb[4].mxu0 %vm1168_vm5, %v1317_v58 }
 0x4fc   : > { %2853 = vmatpush3.bf16.msra.mxu0 %v3548_v50  ;;  %2826 = vmatprep.mubr.msk.bf16.mxu0 %vm3207_vm4, %v3205_v15 }
 0x4fd   : > { %2884 = vmatprep.subr.bf16.mxu0 %v3205_v15 }
 0x503   : > { %2827 = vmatmul.mubr.msk.bf16.gmra.mrb[8].mxu0 %vm1168_vm5, %v1319_v59 }
 0x504   : > { %2854 = vmatprep.mubr.msk.bf16.mxu0 %vm3207_vm4, %v3205_v15 }
 0x5c6   : > { %v1378_v61 = vpop.f32.mrb[0].mxu0 }
 0x5c7   : > { %v1379_v63 = vadd.f32 %v1378_v61, %v3577_v60  ;;  %v2820_v1 = vpop.f32.mrb[1].mxu0 }
 0x5c8   : > { %v1381_v2 = vpop.f32.mrb[2].mxu0 }
 0x5c9   : > { %v1382_v3 = vadd.f32 %v1381_v2, %v3582_v62  ;;  %v2821_v4 = vpop.f32.mrb[3].mxu0  ;;  %v1401_v5 = vsel %vm1244_vm6, %v1379_v63, -inf }
 0x5ca   : > { %1402 = vmax.xlane.f32.xlu0 %v1401_v5 }
 0x5cb   : > { %v1404_v6 = vsel %vm1244_vm6, %v1382_v3, -inf }
 0x5cc   : > { %1405 = vmax.xlane.f32.xlu1 %v1404_v6 }
 0x5ce   : > { %v1386_v0 = vpop.f32.mrb[4].mxu0 }
 0x5cf   : > { %v1387_v8 = vadd.f32 %v1386_v0, %v3591_v7  ;;  %v2824_v10 = vpop.f32.mrb[5].mxu0 }
 0x5d0   : > { %v1389_v11 = vpop.f32.mrb[6].mxu0 }
 0x5d1   : > { %v1390_v12 = vadd.f32 %v1389_v11, %v3596_v9  ;;  %v2825_v13 = vpop.f32.mrb[7].mxu0  ;;  %v1407_v14 = vsel %vm1244_vm6, %v1387_v8, -inf }
 0x5d2   : > { %1408 = vmax.xlane.f32.xlu0 %v1407_v14 }
 0x5d3   : > { %v1410_v17 = vsel %vm1244_vm6, %v1390_v12, -inf }
 0x5d6   : > { %1411 = vmax.xlane.f32.xlu0 %v1410_v17  ;;  %v1394_v18 = vpop.f32.mrb[8].mxu0 }
 0x5d7   : > { %v1395_v19 = vadd.f32 %v1394_v18, %v3604_v16  ;;  %v2828_v20 = vpop.f32.mrb[9].mxu0 }
 0x5d8   : > { %v1397_v21 = vpop.f32.mrb[10].mxu0 }
 0x5d9   : > { %v2829_v22 = vpop.f32.mrb[11].mxu0  ;;  %v1413_v23 = vsel %vm1244_vm6, %v1395_v19, -inf  ;;  %v1398_v25 = vadd.f32 %v1397_v21, %v3616_v24 }
 0x5da   : > { %1414 = vmax.xlane.f32.xlu0 %v1413_v23 }
 0x5db   : > { %v1416_v26 = vsel %vm1244_vm6, %v1398_v25, -inf }
 0x5dd   : > { %1164 = vrot.lane.b32.xlu1 %v3536_v39, %s3209_s24 }
 0x5f0   : > { %1162 = vrot.lane.b32.xlu0 %v3531_v29, %s3209_s24 }
 0x601   : > { %1417 = vmax.xlane.f32.xlu1 %v1416_v26 }
 0x612   : > { %1166 = vrot.lane.b32.xlu1 %v3546_v49, %s3209_s24 }
 0x616   : > { %1473 = vrot.lane.b32.xlu1 %v3533_v30, %s3209_s24 }
 0x657   : > { %v1403_v27 = vpop.xlane.xlu0 %1402 }
 0x658   : > { %v1419_v28 = vsub.f32 %v1379_v63, %v1403_v27 }
 0x659   : > { %v1406_v31 = vpop.xlane.xlu1 %1405 }
 0x65a   : > { %v1425_v32 = vmul.f32 1.442695, %v1419_v28  ;;  %v1420_v33 = vsub.f32 %v1382_v3, %v1406_v31 }
 0x65c   : > { %3056 = vpow2.f32 %v1425_v32  ;;  %v1427_v34 = vmul.f32 1.442695, %v1420_v33 }
 0x65d   : > { %v1165_v56 = vpop.permute.xlu1 %1164 }
 0x65e   : > { %3058 = vpow2.f32 %v1427_v34  ;;  %v1182_v59 = vsel %vm1168_vm5, %v1165_v56, 0 }
 0x65f   : > { %v1409_v35 = vpop.xlane.xlu0 %1408 }
 0x660   : > { %v1421_v36 = vsub.f32 %v1387_v8, %v1409_v35 }
 0x662   : > { %v1429_v37 = vmul.f32 1.442695, %v1421_v36 }
 0x663   : > { %v1412_v38 = vpop.xlane.xlu0 %1411 }
 0x664   : > { %3060 = vpow2.f32 %v1429_v37  ;;  %v1422_v41 = vsub.f32 %v1390_v12, %v1412_v38 }
 0x666   : > { %v3624_v42 = vpop.eup %3056  ;;  %v1431_v43 = vmul.f32 1.442695, %v1422_v41 }
 0x667   : > { %v1415_v44 = vpop.xlane.xlu0 %1414  ;;  %v1437_v45 = vsel %vm1244_vm6, %v3624_v42, 0.0 }
 0x668   : > { %v3628_v46 = vpop.eup %3058  ;;  %3062 = vpow2.f32 %v1431_v43  ;;  %v1423_v47 = vsub.f32 %v1395_v19, %v1415_v44  ;;  %1438 = vadd.xlane.f32.xlu1 %v1437_v45 }
 0x669   : > { %v1440_v48 = vsel %vm1244_vm6, %v3628_v46, 0.0 }
 0x66a   : > { %v1433_v51 = vmul.f32 1.442695, %v1423_v47  ;;  %1441 = vadd.xlane.f32.xlu0 %v1440_v48 }
 0x66b   : > { %v1163_v52 = vpop.permute.xlu0 %1162 }
 0x66c   : > { %3064 = vpow2.f32 %v1433_v51  ;;  %v1179_v53 = vsel %vm1168_vm5, %v1163_v52, 0 }
 0x66d   : > { %2795 = vmatpush3.bf16.xpose.msra.mxu1 %v1179_v53 }
 0x66e   : > { %v3633_v54 = vpop.eup %3060  ;;  %2796 = vmatprep.subr.bf16.mxu1 %v3205_v15 }
 0x66f   : > { %v1443_v55 = vsel %vm1244_vm6, %v3633_v54, 0.0 }
 0x670   : > { %1444 = vadd.xlane.f32.xlu0 %v1443_v55 }
 0x672   : > { %v3638_v57 = vpop.eup %3062 }
 0x673   : > { %v1446_v58 = vsel %vm1244_vm6, %v3638_v57, 0.0 }
 0x674   : > { %1447 = vadd.xlane.f32.xlu0 %v1446_v58 }
 0x675   : > { %2797 = vmatpush3.bf16.xpose.msra.mxu1 %v1182_v59 }
 0x676   : > { %v3643_v61 = vpop.eup %3064  ;;  %2798 = vmatprep.subr.bf16.mxu1 %v3205_v15 }
 0x677   : > { %v1449_v63 = vsel %vm1244_vm6, %v3643_v61, 0.0 }
 0x678   : > { %1450 = vadd.xlane.f32.xlu0 %v1449_v63 }
 0x679   : > { %1477 = vrot.lane.b32.xlu1 %v3548_v50, %s3209_s24 }
 0x67d   : > { %1620 = vrot.lane.b32.xlu1 %v3531_v29, %s3210_s19 }
 0x681   : > { %1622 = vrot.lane.b32.xlu1 %v3536_v39, %s3210_s19 }
 0x685   : > { %1624 = vrot.lane.b32.xlu1 %v3546_v49, %s3210_s19 }
 0x689   : > { %1614 = vrot.lane.b32.xlu1 %v3531_v29, %s3211_s22 }
 0x68d   : > { %1616 = vrot.lane.b32.xlu1 %v3536_v39, %s3211_s22 }
 0x68e   : > { %v1418_v1 = vpop.xlane.xlu1 %1417 }
 0x68f   : > { %v1424_v2 = vsub.f32 %v1398_v25, %v1418_v1 }
 0x691   : > { %v1435_v3 = vmul.f32 1.442695, %v1424_v2  ;;  %1618 = vrot.lane.b32.xlu1 %v3546_v49, %s3211_s22 }
 0x692   : > { %v1167_v4 = vpop.permute.xlu1 %1166 }
 0x693   : > { %3066 = vpow2.f32 %v1435_v3  ;;  %v1185_v5 = vsel %vm1168_vm5, %v1167_v4, 0 }
 0x694   : > { %2799 = vmatpush3.bf16.xpose.msra.mxu1 %v1185_v5 }
 0x695   : > { %1851 = vrot.lane.b32.xlu1 %v3531_v29, %s3212_s27  ;;  %2830 = vmatprep.subr.bf16.mxu1 %v3205_v15 }
 0x696   : > { %v1474_v6 = vpop.permute.xlu1 %1473 }
 0x699   : > { %1855 = vrot.lane.b32.xlu1 %v3546_v49, %s3212_s27 }
 0x69b   : > { %2801 = vmatmul.mubr.msk.bf16.vlgmr.msra.gmra.mrb[12].mxu1 %vm1168_vm5, %v3531_v29 }
 0x69c   : > { %2831 = vmatpush3.bf16.msra.mxu1 %v1474_v6  ;;  %2804 = vmatprep.mubr.msk.bf16.mxu1 %vm3207_vm4, %v3205_v15 }
 0x69d   : > { %v3067_v0 = vpop.eup %3066  ;;  %2832 = vmatprep.subr.bf16.mxu1 %v3205_v15 }
 0x69e   : > { %v1452_v8 = vsel %vm1244_vm6, %v3067_v0, 0.0 }
 0x69f   : > { %1453 = vadd.xlane.f32.xlu0 %v1452_v8 }
 0x6a3   : > { %2805 = vmatmul.mubr.msk.bf16.gmra.mrb[16].mxu1 %vm1168_vm5, %v3536_v39 }
 0x6a4   : > { %2808 = vmatprep.mubr.msk.bf16.mxu1 %vm3207_vm4, %v3205_v15 }
 0x6ab   : > { %2809 = vmatmul.mubr.msk.bf16.gmra.mrb[20].mxu1 %vm1168_vm5, %v3546_v49 }
 0x6ac   : > { %2836 = vmatprep.mubr.msk.bf16.mxu1 %vm3207_vm4, %v3205_v15 }
 0x6b5   : > { %1475 = vrot.lane.b32.xlu0 %v3538_v40, %s3209_s24 }
 0x6b9   : > { %1857 = vrot.lane.b32.xlu0 %v3531_v29, %s3213_s6 }
 0x6bd   : > { %1859 = vrot.lane.b32.xlu0 %v3536_v39, %s3213_s6 }
 0x6c1   : > { %1861 = vrot.lane.b32.xlu0 %v3546_v49, %s3213_s6 }
 0x6c5   : > { %1853 = vrot.lane.b32.xlu0 %v3536_v39, %s3212_s27  ;;  %s4170_s27 = scalar_lea.vmem %s4138_s14, %s3314_s26 }
 0x6f5   : > { %v1439_v13 = vpop.xlane.xlu1 %1438 }
 0x6f7   : > { %v1442_v10 = vpop.xlane.xlu0 %1441 }
 0x6f8   : > { %3068 = vrcp.f32 %v1442_v10 }
 0x6f9   : > { %3070 = vrcp.f32 %v1439_v13  ;;  %v1478_v49 = vpop.permute.xlu1 %1477 }
 0x6fd   : > { %v1445_v11 = vpop.xlane.xlu0 %1444  ;;  %v1621_v25 = vpop.permute.xlu1 %1620 }
 0x6fe   : > { %v1636_v28 = vsel %vm1168_vm5, %v1621_v25, 0 }
 0x701   : > { %v1448_v12 = vpop.xlane.xlu0 %1447  ;;  %v1623_v34 = vpop.permute.xlu1 %1622 }
 0x702   : > { %3072 = vrcp.f32 %v1448_v12  ;;  %v3069_v18 = vpop.eup %3068  ;;  %v1639_v37 = vsel %vm1168_vm5, %v1623_v34, 0 }
 0x703   : > { %3074 = vrcp.f32 %v1445_v11  ;;  %v3071_v20 = vpop.eup %3070  ;;  %v1462_v29 = vmul.f32 %v3069_v18, %v3628_v46 }
 0x704   : > { %v1461_v39 = vmul.f32 %v3071_v20, %v3624_v42 }
 0x705   : > { %v1451_v14 = vpop.xlane.xlu0 %1450  ;;  %v1625_v41 = vpop.permute.xlu1 %1624 }
 0x706   : > { %v1467_v21 = vpack.c.bf16 %v1462_v29, %v1461_v39  ;;  %v1642_v42 = vsel %vm1168_vm5, %v1625_v41, 0 }
 0x709   : > { %v1615_v44 = vpop.permute.xlu1 %1614 }
 0x70c   : > { %v3073_v22 = vpop.eup %3072 }
 0x70d   : > { %v3075_v23 = vpop.eup %3074  ;;  %v1464_v26 = vmul.f32 %v3073_v22, %v3638_v57  ;;  %v1617_v47 = vpop.permute.xlu1 %1616 }
 0x70e   : > { %v1463_v27 = vmul.f32 %v3075_v23, %v3633_v54 }
 0x710   : > { %v1468_v31 = vpack.c.bf16 %v1464_v26, %v1463_v27 }
 0x711   : > { %v1619_v52 = vpop.permute.xlu1 %1618 }
 0x715   : > { %v1852_v54 = vpop.permute.xlu1 %1851 }
 0x719   : > { %v1856_v11 = vpop.permute.xlu1 %1855 }
 0x72c   : > { %v1454_v17 = vpop.xlane.xlu0 %1453 }
 0x72d   : > { %3076 = vrcp.f32 %v1454_v17 }
 0x72e   : > { %3078 = vrcp.f32 %v1451_v14 }
 0x730   : > { %v1476_v19 = vpop.permute.xlu0 %1475 }
 0x731   : > { %2833 = vmatpush3.bf16.msra.mxu1 %v1476_v19 }
 0x732   : > { %2834 = vmatprep.subr.bf16.mxu1 %v3205_v15 }
 0x734   : > { %v1858_v43 = vpop.permute.xlu0 %1857 }
 0x735   : > { %2835 = vmatpush3.bf16.msra.mxu1 %v1478_v49  ;;  %v1873_v45 = vsel %vm1168_vm5, %v1858_v43, 0 }
 0x736   : > { %2866 = vmatprep.subr.bf16.mxu1 %v3205_v15 }
 0x737   : > { %v3077_v32 = vpop.eup %3076 }
 0x738   : > { %2837 = vmatmul.mubr.msk.bf16.vlgmr.msra.gmra.mrb[24].mxu1 %vm1244_vm6, %v1467_v21  ;;  %v3079_v33 = vpop.eup %3078  ;;  %v1466_v35 = vmul.f32 %v3077_v32, %v3067_v0  ;;  %v1860_v46 = vpop.permute.xlu0 %1859 }
 0x739   : > { %2840 = vmatprep.mubr.msk.bf16.mxu1 %vm3207_vm4, %v3205_v15  ;;  %v1465_v36 = vmul.f32 %v3079_v33, %v3643_v61  ;;  %v1876_v48 = vsel %vm1168_vm5, %v1860_v46, 0 }
 0x73b   : > { %v1469_v38 = vpack.c.bf16 %v1466_v35, %v1465_v36 }
 0x73c   : > { %v1862_v51 = vpop.permute.xlu0 %1861 }
 0x73d   : > { %v1879_v53 = vsel %vm1168_vm5, %v1862_v51, 0 }
 0x73e   : > { %2867 = vmatpush3.bf16.xpose.msra.mxu1 %v1636_v28 }
 0x73f   : > { %2868 = vmatprep.subr.bf16.mxu1 %v3205_v15 }
 0x740   : > { %2841 = vmatmul.mubr.msk.bf16.gmra.mrb[28].mxu1 %vm1244_vm6, %v1468_v31  ;;  %v1854_v2 = vpop.permute.xlu0 %1853 }
 0x741   : > { %2844 = vmatprep.mubr.msk.bf16.mxu1 %vm3207_vm4, %v3205_v15 }
 0x746   : > { %2869 = vmatpush3.bf16.xpose.msra.mxu1 %v1639_v37 }
 0x747   : > { %2870 = vmatprep.subr.bf16.mxu1 %v3205_v15 }
 0x748   : > { %2845 = vmatmul.mubr.msk.bf16.gmra.mrb[32].mxu1 %vm1244_vm6, %v1469_v38 }
 0x749   : > { %2872 = vmatprep.mubr.msk.bf16.mxu1 %vm3207_vm4, %v3205_v15 }
 0x74e   : > { %2871 = vmatpush3.bf16.xpose.msra.mxu1 %v1642_v42 }
 0x74f   : > { %2902 = vmatprep.subr.bf16.mxu1 %v3205_v15 }
 0x755   : > { %2873 = vmatmul.mubr.msk.bf16.vlgmr.msra.gmra.mrb[36].mxu1 %vm1168_vm5, %v1615_v44 }
 0x756   : > { %2903 = vmatpush3.bf16.xpose.msra.mxu1 %v1873_v45  ;;  %2876 = vmatprep.mubr.msk.bf16.mxu1 %vm3207_vm4, %v3205_v15 }
 0x757   : > { %2904 = vmatprep.subr.bf16.mxu1 %v3205_v15 }
 0x75d   : > { %2877 = vmatmul.mubr.msk.bf16.gmra.mrb[40].mxu1 %vm1168_vm5, %v1617_v47 }
 0x75e   : > { %2905 = vmatpush3.bf16.xpose.msra.mxu1 %v1876_v48  ;;  %2880 = vmatprep.mubr.msk.bf16.mxu1 %vm3207_vm4, %v3205_v15 }
 0x75f   : > { %2906 = vmatprep.subr.bf16.mxu1 %v3205_v15 }
 0x765   : > { %2881 = vmatmul.mubr.msk.bf16.gmra.mrb[44].mxu1 %vm1168_vm5, %v1619_v52 }
 0x766   : > { %2907 = vmatpush3.bf16.xpose.msra.mxu1 %v1879_v53  ;;  %2908 = vmatprep.mubr.msk.bf16.mxu1 %vm3207_vm4, %v3205_v15 }
 0x767   : > { %2938 = vmatprep.subr.bf16.mxu1 %v3205_v15 }
 0x76d   : > { %2909 = vmatmul.mubr.msk.bf16.vlgmr.msra.gmra.mrb[48].mxu1 %vm1168_vm5, %v1852_v54 }
 0x76e   : > { %v1221_v55 = vpop.f32.mrb[12].mxu1  ;;  %2912 = vmatprep.mubr.msk.bf16.mxu1 %vm3207_vm4, %v3205_v15 }
 0x76f   : > { %v1222_v56 = vadd.f32 %v1221_v55, %v3577_v60  ;;  %v2802_v57 = vpop.f32.mrb[13].mxu1 }
 0x770   : > { %v1224_v58 = vpop.f32.mrb[14].mxu1 }
 0x771   : > { %v1225_v59 = vadd.f32 %v1224_v58, %v3582_v62  ;;  %v2803_v61 = vpop.f32.mrb[15].mxu1  ;;  %v1245_v63 = vsel %vm1244_vm6, %v1222_v56, -inf }
 0x772   : > { %1246 = vmax.xlane.f32.xlu0 %v1245_v63 }
 0x773   : > { %v1248_v1 = vsel %vm1244_vm6, %v1225_v59, -inf }
 0x774   : > { %1249 = vmax.xlane.f32.xlu1 %v1248_v1 }
 0x775   : > { %2913 = vmatmul.mubr.msk.bf16.gmra.mrb[52].mxu1 %vm1168_vm5, %v1854_v2 }
 0x776   : > { %v1229_v3 = vpop.f32.mrb[16].mxu1  ;;  %2916 = vmatprep.mubr.msk.bf16.mxu1 %vm3207_vm4, %v3205_v15 }
 0x777   : > { %v1230_v4 = vadd.f32 %v1229_v3, %v3591_v7  ;;  %v2806_v5 = vpop.f32.mrb[17].mxu1 }
 0x778   : > { %v1232_v6 = vpop.f32.mrb[18].mxu1 }
 0x779   : > { %v1233_v0 = vadd.f32 %v1232_v6, %v3596_v9  ;;  %v2807_v8 = vpop.f32.mrb[19].mxu1  ;;  %v1251_v10 = vsel %vm1244_vm6, %v1230_v4, -inf }
 0x77a   : > { %1252 = vmax.xlane.f32.xlu0 %v1251_v10 }
 0x77b   : > { %v1254_v12 = vsel %vm1244_vm6, %v1233_v0, -inf }
 0x77d   : > { %2917 = vmatmul.mubr.msk.bf16.gmra.mrb[56].mxu1 %vm1168_vm5, %v1856_v11 }
 0x77e   : > { %1255 = vmax.xlane.f32.xlu0 %v1254_v12  ;;  %v1237_v13 = vpop.f32.mrb[20].mxu1  ;;  %2942 = vmatprep.mubr.msk.bf16.mxu1 %vm3207_vm4, %v3205_v15 }
 0x77f   : > { %v1238_v14 = vadd.f32 %v1237_v13, %v3604_v16  ;;  %v2810_v17 = vpop.f32.mrb[21].mxu1 }
 0x780   : > { %v1240_v18 = vpop.f32.mrb[22].mxu1 }
 0x781   : > { %v1241_v19 = vadd.f32 %v1240_v18, %v3616_v24  ;;  %v2811_v20 = vpop.f32.mrb[23].mxu1  ;;  %v1257_v29 = vsel %vm1244_vm6, %v1238_v14, -inf }
 0x782   : > { %1258 = vmax.xlane.f32.xlu0 %v1257_v29 }
 0x783   : > { %v1260_v39 = vsel %vm1244_vm6, %v1241_v19, -inf }
 0x784   : > { %1261 = vmax.xlane.f32.xlu1 %v1260_v39 }
 0x7ff   : > { %v1247_v49 = vpop.xlane.xlu0 %1246 }
 0x800   : > { %v1263_v21 = vsub.f32 %v1222_v56, %v1247_v49 }
 0x801   : > { %v1250_v22 = vpop.xlane.xlu1 %1249 }
 0x802   : > { %v1269_v23 = vmul.f32 1.442695, %v1263_v21  ;;  %v1264_v25 = vsub.f32 %v1225_v59, %v1250_v22 }
 0x804   : > { %3080 = vpow2.f32 %v1269_v23  ;;  %v1271_v26 = vmul.f32 1.442695, %v1264_v25 }
 0x806   : > { %3082 = vpow2.f32 %v1271_v26 }
 0x807   : > { %v1253_v27 = vpop.xlane.xlu0 %1252 }
 0x808   : > { %v1265_v28 = vsub.f32 %v1230_v4, %v1253_v27 }
 0x80a   : > { %v1273_v31 = vmul.f32 1.442695, %v1265_v28 }
 0x80b   : > { %v3738_v32 = vpop.f32.mrb[24].mxu1  ;;  %v1256_v33 = vpop.xlane.xlu0 %1255 }
 0x80c   : > { %3084 = vpow2.f32 %v1273_v31  ;;  %v1266_v34 = vsub.f32 %v1233_v0, %v1256_v33  ;;  %v2838_v35 = vpop.f32.mrb[25].mxu1 }
 0x80d   : > { %v3740_v36 = vpop.f32.mrb[26].mxu1 }
 0x80e   : > { %v3742_v37 = vpop.eup %3080  ;;  %v1275_v38 = vmul.f32 1.442695, %v1266_v34  ;;  %v2839_v41 = vpop.f32.mrb[27].mxu1 }
 0x80f   : > { %v1259_v42 = vpop.xlane.xlu0 %1258  ;;  %v1281_v43 = vsel %vm1244_vm6, %v3742_v37, 0.0 }
 0x810   : > { %v3746_v44 = vpop.eup %3082  ;;  %3086 = vpow2.f32 %v1275_v38  ;;  %v1267_v45 = vsub.f32 %v1238_v14, %v1259_v42  ;;  %1282 = vadd.xlane.f32.xlu0 %v1281_v43 }
 0x811   : > { %v1262_v46 = vpop.xlane.xlu1 %1261  ;;  %v1284_v47 = vsel %vm1244_vm6, %v3746_v44, 0.0 }
 0x812   : > { %v1277_v48 = vmul.f32 1.442695, %v1267_v45  ;;  %v1268_v51 = vsub.f32 %v1241_v19, %v1262_v46  ;;  %1285 = vadd.xlane.f32.xlu1 %v1284_v47 }
 0x813   : > { %v3750_v52 = vpop.f32.mrb[28].mxu1 }
 0x814   : > { %3088 = vpow2.f32 %v1277_v48  ;;  %v1279_v53 = vmul.f32 1.442695, %v1268_v51  ;;  %v2842_v54 = vpop.f32.mrb[29].mxu1 }
 0x815   : > { %v3752_v55 = vpop.f32.mrb[30].mxu1 }
 0x816   : > { %v3754_v56 = vpop.eup %3084  ;;  %3090 = vpow2.f32 %v1279_v53  ;;  %v2843_v57 = vpop.f32.mrb[31].mxu1 }
 0x817   : > { %v1287_v58 = vsel %vm1244_vm6, %v3754_v56, 0.0 }
 0x818   : > { %1288 = vadd.xlane.f32.xlu0 %v1287_v58 }
 0x81a   : > { %v3758_v59 = vpop.eup %3086 }
 0x81b   : > { %v3760_v61 = vpop.f32.mrb[32].mxu1  ;;  %v1290_v63 = vsel %vm1244_vm6, %v3758_v59, 0.0 }
 0x81c   : > { %v2846_v1 = vpop.f32.mrb[33].mxu1  ;;  %1291 = vadd.xlane.f32.xlu1 %v1290_v63 }
 0x81d   : > { %v3764_v2 = vpop.f32.mrb[34].mxu1 }
 0x81e   : > { %v3766_v3 = vpop.eup %3088  ;;  %v2847_v4 = vpop.f32.mrb[35].mxu1 }
 0x81f   : > { %v1293_v5 = vsel %vm1244_vm6, %v3766_v3, 0.0 }
 0x820   : > { %v3770_v6 = vpop.eup %3090  ;;  %1294 = vadd.xlane.f32.xlu0 %v1293_v5 }
 0x821   : > { %v1296_v0 = vsel %vm1244_vm6, %v3770_v6, 0.0 }
 0x822   : > { %1297 = vadd.xlane.f32.xlu1 %v1296_v0 }
 0x828   : > { %v1678_v8 = vpop.f32.mrb[36].mxu1 }
 0x829   : > { %v3775_v10 = vadd.f32 %v1678_v8, %v3577_v60  ;;  %v2874_v11 = vpop.f32.mrb[37].mxu1 }
 0x82a   : > { %v1681_v12 = vpop.f32.mrb[38].mxu1 }
 0x82b   : > { %v3778_v13 = vadd.f32 %v1681_v12, %v3582_v62  ;;  %v2875_v14 = vpop.f32.mrb[39].mxu1  ;;  %v1701_v17 = vsel %vm1244_vm6, %v3775_v10, -inf }
 0x82c   : > { %1702 = vmax.xlane.f32.xlu0 %v1701_v17 }
 0x82d   : > { %v1704_v18 = vsel %vm1244_vm6, %v3778_v13, -inf }
 0x82e   : > { %1705 = vmax.xlane.f32.xlu1 %v1704_v18 }
 0x830   : > { %v1686_v19 = vpop.f32.mrb[40].mxu1 }
 0x831   : > { %v3785_v20 = vadd.f32 %v1686_v19, %v3591_v7  ;;  %v2878_v29 = vpop.f32.mrb[41].mxu1 }
 0x832   : > { %v1689_v39 = vpop.f32.mrb[42].mxu1 }
 0x833   : > { %v3788_v49 = vadd.f32 %v1689_v39, %v3596_v9  ;;  %v2879_v21 = vpop.f32.mrb[43].mxu1  ;;  %v1707_v22 = vsel %vm1244_vm6, %v3785_v20, -inf }
 0x834   : > { %1708 = vmax.xlane.f32.xlu0 %v1707_v22 }
 0x835   : > { %v1710_v23 = vsel %vm1244_vm6, %v3788_v49, -inf }
 0x836   : > { %1711 = vmax.xlane.f32.xlu1 %v1710_v23 }
 0x838   : > { %v1694_v25 = vpop.f32.mrb[44].mxu1 }
 0x839   : > { %v3795_v26 = vadd.f32 %v1694_v25, %v3604_v16  ;;  %v2882_v27 = vpop.f32.mrb[45].mxu1 }
 0x83a   : > { %v1697_v28 = vpop.f32.mrb[46].mxu1 }
 0x83b   : > { %v3798_v31 = vadd.f32 %v1697_v28, %v3616_v24  ;;  %v2883_v33 = vpop.f32.mrb[47].mxu1  ;;  %v1713_v34 = vsel %vm1244_vm6, %v3795_v26, -inf }
 0x83c   : > { %1714 = vmax.xlane.f32.xlu0 %v1713_v34 }
 0x83d   : > { %v1716_v35 = vsel %vm1244_vm6, %v3798_v31, -inf }
 0x83e   : > { %1717 = vmax.xlane.f32.xlu1 %v1716_v35 }
 0x840   : > { %v1915_v38 = vpop.f32.mrb[48].mxu1 }
 0x841   : > { %v3805_v41 = vadd.f32 %v1915_v38, %v3577_v60  ;;  %v2910_v42 = vpop.f32.mrb[49].mxu1 }
 0x842   : > { %v1918_v43 = vpop.f32.mrb[50].mxu1 }
 0x843   : > { %v3808_v45 = vadd.f32 %v1918_v43, %v3582_v62  ;;  %v2911_v46 = vpop.f32.mrb[51].mxu1  ;;  %v1938_v47 = vsel %vm1244_vm6, %v3805_v41, -inf }
 0x844   : > { %1939 = vmax.xlane.f32.xlu0 %v1938_v47 }
 0x845   : > { %v1941_v48 = vsel %vm1244_vm6, %v3808_v45, -inf }
 0x846   : > { %1942 = vmax.xlane.f32.xlu1 %v1941_v48 }
 0x848   : > { %v1923_v51 = vpop.f32.mrb[52].mxu1 }
 0x849   : > { %v3815_v53 = vadd.f32 %v1923_v51, %v3591_v7  ;;  %v2914_v60 = vpop.f32.mrb[53].mxu1 }
 0x84a   : > { %v1926_v54 = vpop.f32.mrb[54].mxu1 }
 0x84b   : > { %v3818_v57 = vadd.f32 %v1926_v54, %v3596_v9  ;;  %v2915_v62 = vpop.f32.mrb[55].mxu1  ;;  %v1944_v58 = vsel %vm1244_vm6, %v3815_v53, -inf }
 0x84c   : > { %1945 = vmax.xlane.f32.xlu0 %v1944_v58 }
 0x84d   : > { %v1947_v63 = vsel %vm1244_vm6, %v3818_v57, -inf }
 0x84e   : > { %1948 = vmax.xlane.f32.xlu1 %v1947_v63 }
 0x850   : > { %v1931_v1 = vpop.f32.mrb[56].mxu1 }
 0x851   : > { %v2918_v4 = vpop.f32.mrb[57].mxu1  ;;  %v3834_v8 = vadd.f32 %v1931_v1, %v3604_v16 }
 0x852   : > { %v1934_v5 = vpop.f32.mrb[58].mxu1 }
 0x853   : > { %v3825_v7 = vadd.f32 %v1934_v5, %v3616_v24  ;;  %v2919_v0 = vpop.f32.mrb[59].mxu1  ;;  %v1950_v11 = vsel %vm1244_vm6, %v3834_v8, -inf }
 0x855   : > { %v1953_v9 = vsel %vm1244_vm6, %v3825_v7, -inf }
 0x856   : > { %1954 = vmax.xlane.f32.xlu1 %v1953_v9 }
 0x862   : > { %1770 = vrot.lane.b32.xlu0 %v3533_v30, %s3214_s1 }
 0x867   : > { %1772 = vrot.lane.b32.xlu1 %v3538_v40, %s3214_s1 }
 0x881   : > { %1951 = vmax.xlane.f32.xlu0 %v1950_v11 }
 0x89d   : > { %v1283_v24 = vpop.xlane.xlu0 %1282 }
 0x89e   : > { %3092 = vrcp.f32 %v1283_v24 }
 0x89f   : > { %v1286_v12 = vpop.xlane.xlu1 %1285 }
 0x8a0   : > { %3094 = vrcp.f32 %v1286_v12 }
 0x8a5   : > { %v1289_v14 = vpop.xlane.xlu0 %1288 }
 0x8a6   : > { %3096 = vrcp.f32 %v1289_v14 }
 0x8a8   : > { %v3093_v17 = vpop.eup %3092 }
 0x8a9   : > { %v1292_v18 = vpop.xlane.xlu1 %1291  ;;  %v1305_v29 = vmul.f32 %v3093_v17, %v3742_v37 }
 0x8aa   : > { %v3095_v19 = vpop.eup %3094  ;;  %3098 = vrcp.f32 %v1292_v18 }
 0x8ab   : > { %v1306_v39 = vmul.f32 %v3095_v19, %v3746_v44 }
 0x8ad   : > { %v1311_v16 = vpack.c.bf16 %v1306_v39, %v1305_v29  ;;  %v1295_v21 = vpop.xlane.xlu0 %1294 }
 0x8ae   : > { %3100 = vrcp.f32 %v1295_v21 }
 0x8af   : > { %v1298_v22 = vpop.xlane.xlu1 %1297  ;;  %2855 = vmatmul.mubr.msk.bf16.vlgmr.msra.gmra.mrb[12].mxu0 %vm1244_vm6, %v1311_v16 }
 0x8b0   : > { %3102 = vrcp.f32 %v1298_v22  ;;  %2858 = vmatprep.mubr.msk.bf16.mxu0 %vm3207_vm4, %v3205_v15  ;;  %v3097_v23 = vpop.eup %3096 }
 0x8b1   : > { %v1307_v27 = vmul.f32 %v3097_v23, %v3754_v56 }
 0x8b4   : > { %v3099_v25 = vpop.eup %3098 }
 0x8b5   : > { %v1308_v28 = vmul.f32 %v3099_v25, %v3758_v59 }
 0x8b7   : > { %v1312_v33 = vpack.c.bf16 %v1308_v28, %v1307_v27 }
 0x8b8   : > { %v3101_v37 = vpop.eup %3100 }
 0x8b9   : > { %2859 = vmatmul.mubr.msk.bf16.gmra.mrb[16].mxu0 %vm1244_vm6, %v1312_v33  ;;  %v1703_v44 = vpop.xlane.xlu0 %1702  ;;  %v1309_v56 = vmul.f32 %v3101_v37, %v3766_v3 }
 0x8ba   : > { %v3103_v34 = vpop.eup %3102  ;;  %v1719_v35 = vsub.f32 %v3775_v10, %v1703_v44  ;;  %2862 = vmatprep.mubr.msk.bf16.mxu0 %vm3207_vm4, %v3205_v15 }
 0x8bb   : > { %v1706_v38 = vpop.xlane.xlu1 %1705  ;;  %v1310_v42 = vmul.f32 %v3103_v34, %v3770_v6 }
 0x8bc   : > { %v1725_v43 = vmul.f32 1.442695, %v1719_v35  ;;  %v1720_v46 = vsub.f32 %v3778_v13, %v1706_v38 }
 0x8bd   : > { %v1313_v47 = vpack.c.bf16 %v1310_v42, %v1309_v56 }
 0x8be   : > { %3104 = vpow2.f32 %v1725_v43  ;;  %v1727_v59 = vmul.f32 1.442695, %v1720_v46 }
 0x8c0   : > { %3106 = vpow2.f32 %v1727_v59 }
 0x8c1   : > { %2863 = vmatmul.mubr.msk.bf16.gmra.mrb[20].mxu0 %vm1244_vm6, %v1313_v47  ;;  %v1709_v6 = vpop.xlane.xlu0 %1708 }
 0x8c2   : > { %2890 = vmatprep.mubr.msk.bf16.mxu0 %vm3207_vm4, %v3205_v15  ;;  %v1721_v22 = vsub.f32 %v3785_v20, %v1709_v6 }
 0x8c3   : > { %v1712_v10 = vpop.xlane.xlu1 %1711 }
 0x8c4   : > { %v1722_v48 = vsub.f32 %v3788_v49, %v1712_v10  ;;  %v1729_v27 = vmul.f32 1.442695, %v1721_v22 }
 0x8c6   : > { %v1731_v51 = vmul.f32 1.442695, %v1722_v48 }
 0x8c8   : > { %v3856_v60 = vpop.eup %3104  ;;  %3108 = vpow2.f32 %v1731_v51 }
 0x8c9   : > { %v1737_v3 = vsel %vm1244_vm6, %v3856_v60, 0.0  ;;  %v1715_v63 = vpop.xlane.xlu0 %1714 }
 0x8ca   : > { %v3860_v13 = vpop.eup %3106  ;;  %1738 = vadd.xlane.f32.xlu0 %v1737_v3  ;;  %v1723_v28 = vsub.f32 %v3795_v26, %v1715_v63 }
 0x8cb   : > { %v1718_v54 = vpop.xlane.xlu1 %1717  ;;  %v1740_v62 = vsel %vm1244_vm6, %v3860_v13, 0.0 }
 0x8cc   : > { %v1724_v58 = vsub.f32 %v3798_v31, %v1718_v54  ;;  %1741 = vadd.xlane.f32.xlu1 %v1740_v62  ;;  %v1733_v37 = vmul.f32 1.442695, %v1723_v28 }
 0x8ce   : > { %v1735_v49 = vmul.f32 1.442695, %v1724_v58 }
 0x8d0   : > { %3110 = vpow2.f32 %v1735_v49 }
 0x8d1   : > { %v1940_v1 = vpop.xlane.xlu0 %1939 }
 0x8d2   : > { %v3865_v4 = vpop.eup %3108  ;;  %v1956_v5 = vsub.f32 %v3805_v41, %v1940_v1 }
 0x8d3   : > { %v1746_v0 = vsel %vm1244_vm6, %v3865_v4, 0.0  ;;  %v1943_v11 = vpop.xlane.xlu1 %1942 }
 0x8d4   : > { %v1962_v9 = vmul.f32 1.442695, %v1956_v5  ;;  %1747 = vadd.xlane.f32.xlu1 %v1746_v0  ;;  %v1957_v44 = vsub.f32 %v3808_v45, %v1943_v11 }
 0x8d6   : > { %3112 = vpow2.f32 %v1962_v9  ;;  %v1964_v20 = vmul.f32 1.442695, %v1957_v44 }
 0x8d9   : > { %v1946_v24 = vpop.xlane.xlu0 %1945 }
 0x8da   : > { %v3870_v12 = vpop.eup %3110  ;;  %v1958_v31 = vsub.f32 %v3815_v53, %v1946_v24 }
 0x8db   : > { %v1949_v14 = vpop.xlane.xlu1 %1948  ;;  %v1752_v17 = vsel %vm1244_vm6, %v3870_v12, 0.0 }
 0x8dc   : > { %v1966_v18 = vmul.f32 1.442695, %v1958_v31  ;;  %v1959_v19 = vsub.f32 %v3818_v57, %v1949_v14  ;;  %1753 = vadd.xlane.f32.xlu1 %v1752_v17 }
 0x8dd   : > { %v1771_v41 = vpop.permute.xlu0 %1770 }
 0x8de   : > { %3114 = vpow2.f32 %v1966_v18  ;;  %v1968_v29 = vmul.f32 1.442695, %v1959_v19  ;;  %2885 = vmatpush3.bf16.msra.mxu0 %v1771_v41 }
 0x8df   : > { %2886 = vmatprep.subr.bf16.mxu0 %v3205_v15 }
 0x8e0   : > { %v3877_v39 = vpop.eup %3112  ;;  %3116 = vpow2.f32 %v1968_v29  ;;  %1774 = vrot.lane.b32.xlu0 %v3548_v50, %s3214_s1  ;;  %s4171_s1 = scalar_lea.vmem %s4140_s16, %s3314_s26 }
 0x8e1   : > { %v1974_v53 = vsel %vm1244_vm6, %v3877_v39, 0.0  ;;  %3118 = vpow2.f32 %v1729_v27 }
 0x8e2   : > { %1975 = vadd.xlane.f32.xlu1 %v1974_v53  ;;  %3120 = vpow2.f32 %v1733_v37 }
 0x8e3   : > { %v1955_v16 = vpop.xlane.xlu1 %1954  ;;  %3122 = vpow2.f32 %v1964_v20 }
 0x8e4   : > { %v1961_v43 = vsub.f32 %v3825_v7, %v1955_v16 }
 0x8e6   : > { %v1972_v59 = vmul.f32 1.442695, %v1961_v43 }
 0x8e7   : > { %v1773_v21 = vpop.permute.xlu1 %1772 }
 0x8e8   : > { %v3883_v57 = vpop.eup %3114  ;;  %2887 = vmatpush3.bf16.msra.mxu0 %v1773_v21 }
 0x8e9   : > { %v1980_v23 = vsel %vm1244_vm6, %v3883_v57, 0.0  ;;  %2888 = vmatprep.subr.bf16.mxu0 %v3205_v15 }
 0x8ea   : > { %v3889_v25 = vpop.eup %3116  ;;  %1981 = vadd.xlane.f32.xlu1 %v1980_v23 }
 0x8eb   : > { %v1983_v33 = vsel %vm1244_vm6, %v3889_v25, 0.0  ;;  %v3895_v34 = vpop.eup %3118 }
 0x8ec   : > { %v1743_v35 = vsel %vm1244_vm6, %v3895_v34, 0.0  ;;  %v3899_v38 = vpop.eup %3120 }
 0x8ed   : > { %v1749_v26 = vsel %vm1244_vm6, %v3899_v38, 0.0  ;;  %v3903_v42 = vpop.eup %3122 }
 0x8ee   : > { %1984 = vadd.xlane.f32.xlu1 %v1983_v33  ;;  %v1977_v45 = vsel %vm1244_vm6, %v3903_v42, 0.0 }
 0x8ff   : > { %1744 = vadd.xlane.f32.xlu0 %v1743_v35 }
 0x903   : > { %1750 = vadd.xlane.f32.xlu0 %v1749_v26 }
 0x907   : > { %1978 = vadd.xlane.f32.xlu0 %v1977_v45 }
 0x90e   : > { %v1952_v46 = vpop.xlane.xlu0 %1951 }
 0x90f   : > { %v1960_v56 = vsub.f32 %v3834_v8, %v1952_v46 }
 0x911   : > { %v1970_v47 = vmul.f32 1.442695, %v1960_v56 }
 0x913   : > { %3124 = vpow2.f32 %v1970_v47 }
 0x914   : > { %3126 = vpow2.f32 %v1972_v59 }
 0x91d   : > { %v3909_v10 = vpop.eup %3124  ;;  %2009 = vrot.lane.b32.xlu0 %v3538_v40, %s3215_s29 }
 0x91e   : > { %v1986_v48 = vsel %vm1244_vm6, %v3909_v10, 0.0  ;;  %v3914_v51 = vpop.eup %3126 }
 0x91f   : > { %1987 = vadd.xlane.f32.xlu1 %v1986_v48  ;;  %v1989_v7 = vsel %vm1244_vm6, %v3914_v51, 0.0 }
 0x921   : > { %2011 = vrot.lane.b32.xlu0 %v3548_v50, %s3215_s29 }
 0x923   : > { %1990 = vadd.xlane.f32.xlu1 %v1989_v7 }
 0x934   : > { %2007 = vrot.lane.b32.xlu1 %v3533_v30, %s3215_s29 }
 0x957   : > { %v1739_v8 = vpop.xlane.xlu0 %1738 }
 0x958   : > { %3128 = vrcp.f32 %v1739_v8 }
 0x959   : > { %v1742_v6 = vpop.xlane.xlu1 %1741 }
 0x95a   : > { %3130 = vrcp.f32 %v1742_v6 }
 0x95b   : > { %v1775_v3 = vpop.permute.xlu0 %1774 }
 0x95c   : > { %2889 = vmatpush3.bf16.msra.mxu0 %v1775_v3 }
 0x95d   : > { %2920 = vmatprep.subr.bf16.mxu0 %v3205_v15 }
 0x961   : > { %v1748_v9 = vpop.xlane.xlu1 %1747 }
 0x962   : > { %v3129_v40 = vpop.eup %3128  ;;  %3132 = vrcp.f32 %v1748_v9 }
 0x963   : > { %v1761_v62 = vmul.f32 %v3129_v40, %v3856_v60 }
 0x964   : > { %v3131_v54 = vpop.eup %3130 }
 0x965   : > { %v1762_v50 = vmul.f32 %v3131_v54, %v3860_v13 }
 0x967   : > { %v1767_v58 = vpack.c.bf16 %v1762_v50, %v1761_v62 }
 0x969   : > { %2891 = vmatmul.mubr.msk.bf16.vlgmr.msra.gmra.mrb[24].mxu0 %vm1244_vm6, %v1767_v58  ;;  %v1754_v17 = vpop.xlane.xlu1 %1753 }
 0x96a   : > { %2894 = vmatprep.mubr.msk.bf16.mxu0 %vm3207_vm4, %v3205_v15 }
 0x96c   : > { %v3133_v19 = vpop.eup %3132 }
 0x96d   : > { %v1764_v22 = vmul.f32 %v3133_v19, %v3865_v4 }
 0x982   : > { %v1591_v30 = vpop.f32.mrb[12].mxu0 }
 0x983   : > { %v3927_v63 = vadd.f32 %v1591_v30, %v3738_v32  ;;  %v2856_v49 = vpop.f32.mrb[13].mxu0 }
 0x984   : > { %v1594_v1 = vpop.f32.mrb[14].mxu0 }
 0x985   : > { %v3930_v5 = vadd.f32 %v1594_v1, %v3740_v36  ;;  %v2857_v0 = vpop.f32.mrb[15].mxu0 }
 0x98c   : > { %v1599_v60 = vpop.f32.mrb[16].mxu0  ;;  %v1745_v13 = vpop.xlane.xlu0 %1744 }
 0x98d   : > { %v3933_v11 = vadd.f32 %v1599_v60, %v3750_v52  ;;  %3134 = vrcp.f32 %v1745_v13  ;;  %v2860_v24 = vpop.f32.mrb[17].mxu0 }
 0x98e   : > { %v1602_v31 = vpop.f32.mrb[18].mxu0 }
 0x98f   : > { %v3936_v14 = vadd.f32 %v1602_v31, %v3752_v55  ;;  %v2861_v32 = vpop.f32.mrb[19].mxu0 }
 0x990   : > { %v1751_v18 = vpop.xlane.xlu0 %1750 }
 0x991   : > { %3136 = vrcp.f32 %v1751_v18 }
 0x992   : > { %3138 = vrcp.f32 %v1754_v17 }
 0x994   : > { %v1607_v36 = vpop.f32.mrb[20].mxu0  ;;  %v1979_v20 = vpop.xlane.xlu0 %1978 }
 0x995   : > { %v3939_v41 = vadd.f32 %v1607_v36, %v3760_v61  ;;  %v2864_v29 = vpop.f32.mrb[21].mxu0  ;;  %v1976_v61 = vpop.xlane.xlu1 %1975  ;;  %3140 = vrcp.f32 %v1979_v20  ;;  %v3191_v20 = vld [vmem:[%s4162_s25 + $0x18] sm:$0xff] }
 0x996   : > { %v1610_v53 = vpop.f32.mrb[22].mxu0  ;;  %3142 = vrcp.f32 %v1976_v61 }
 0x997   : > { %v3135_v52 = vpop.eup %3134  ;;  %v3942_v16 = vadd.f32 %v1610_v53, %v3764_v2  ;;  %v2865_v21 = vpop.f32.mrb[23].mxu0 }
 0x998   : > { %v1763_v55 = vmul.f32 %v3135_v52, %v3895_v34  ;;  %v2010_v45 = vpop.permute.xlu0 %2009  ;;  %v3189_v52 = vld [vmem:[%s4162_s25 + $0x8] sm:$0xff] }
 0x999   : > { %v1982_v2 = vpop.xlane.xlu1 %1981 }
 0x99a   : > { %v1768_v23 = vpack.c.bf16 %v1764_v22, %v1763_v55 }
 0x99b   : > { %v3137_v27 = vpop.eup %3136 }
 0x99c   : > { %2895 = vmatmul.mubr.msk.bf16.gmra.mrb[28].mxu0 %vm1244_vm6, %v1768_v23  ;;  %v3139_v28 = vpop.eup %3138  ;;  %v1765_v33 = vmul.f32 %v3137_v27, %v3899_v38  ;;  %v2012_v56 = vpop.permute.xlu0 %2011 }
 0x99d   : > { %2898 = vmatprep.mubr.msk.bf16.mxu0 %vm3207_vm4, %v3205_v15  ;;  %v1766_v37 = vmul.f32 %v3139_v28, %v3870_v12  ;;  %v1985_v4 = vpop.xlane.xlu1 %1984 }
 0x99e   : > { %3144 = vrcp.f32 %v1985_v4 }
 0x99f   : > { %v1769_v44 = vpack.c.bf16 %v1766_v37, %v1765_v33  ;;  %v3141_v12 = vpop.eup %3140  ;;  %3146 = vrcp.f32 %v1982_v2  ;;  %v3190_v33 = vld [vmem:[%s4162_s25 + $0x10] sm:$0xff] }
 0x9a0   : > { %v3143_v38 = vpop.eup %3142  ;;  %v1999_v43 = vmul.f32 %v3141_v12, %v3903_v42 }
 0x9a1   : > { %v1998_v46 = vmul.f32 %v3143_v38, %v3877_v39 }
 0x9a3   : > { %v2004_v59 = vpack.c.bf16 %v1999_v43, %v1998_v46  ;;  %v3192_v46 = vld [vmem:[%s4162_s25 + $0x20] sm:$0xff] }
 0x9a4   : > { %2899 = vmatmul.mubr.msk.bf16.gmra.mrb[32].mxu0 %vm1244_vm6, %v1769_v44 }
 0x9a5   : > { %2926 = vmatprep.mubr.msk.bf16.mxu0 %vm3207_vm4, %v3205_v15 }
 0x9a8   : > { %v3145_v47 = vpop.eup %3144 }
 0x9a9   : > { %v3147_v48 = vpop.eup %3146  ;;  %v2001_v42 = vmul.f32 %v3145_v47, %v3889_v25 }
 0x9aa   : > { %v2000_v7 = vmul.f32 %v3147_v48, %v3883_v57 }
 0x9ac   : > { %v1988_v34 = vpop.xlane.xlu1 %1987  ;;  %v2005_v8 = vpack.c.bf16 %v2001_v42, %v2000_v7  ;;  %v3193_v7 = vld [vmem:[%s4162_s25 + $0x28] sm:$0xff] }
 0x9b0   : > { %v1991_v35 = vpop.xlane.xlu1 %1990 }
 0x9b1   : > { %3148 = vrcp.f32 %v1991_v35 }
 0x9b2   : > { %3150 = vrcp.f32 %v1988_v34 }
 0x9b4   : > { %v2008_v26 = vpop.permute.xlu1 %2007 }
 0x9b5   : > { %2921 = vmatpush3.bf16.msra.mxu0 %v2008_v26 }
 0x9b6   : > { %2922 = vmatprep.subr.bf16.mxu0 %v3205_v15 }
 0x9b9   : > { %2923 = vmatpush3.bf16.msra.mxu0 %v2010_v45 }
 0x9ba   : > { %2924 = vmatprep.subr.bf16.mxu0 %v3205_v15 }
 0x9bb   : > { %v3149_v39 = vpop.eup %3148 }
 0x9bc   : > { %v3151_v6 = vpop.eup %3150  ;;  %v2003_v3 = vmul.f32 %v3149_v39, %v3914_v51 }
 0x9bd   : > { %2925 = vmatpush3.bf16.msra.mxu0 %v2012_v56  ;;  %v2002_v40 = vmul.f32 %v3151_v6, %v3909_v10 }
 0x9be   : > { %2954 = vmatprep.subr.bf16.mxu0 %v3205_v15 }
 0x9bf   : > { %v2006_v54 = vpack.c.bf16 %v2003_v3, %v2002_v40 }
 0x9c0   : > { %2927 = vmatmul.mubr.msk.bf16.vlgmr.msra.gmra.mrb[36].mxu0 %vm1244_vm6, %v2004_v59 }
 0x9c1   : > { %2930 = vmatprep.mubr.msk.bf16.mxu0 %vm3207_vm4, %v3205_v15 }
 0x9c8   : > { %2931 = vmatmul.mubr.msk.bf16.gmra.mrb[40].mxu0 %vm1244_vm6, %v2005_v8 }
 0x9c9   : > { %2934 = vmatprep.mubr.msk.bf16.mxu0 %vm3207_vm4, %v3205_v15 }
 0x9d0   : > { %2935 = vmatmul.mubr.msk.bf16.gmra.mrb[44].mxu0 %vm1244_vm6, %v2006_v54 }
 0x9d1   : > { %2970 = vmatprep.mubr.msk.bf16.mxu0 %vm3207_vm4, %v3205_v15 }
 0xa3c   : > { %v1822_v25 = vpop.f32.mrb[24].mxu0 }
 0xa3d   : > { %v1845_v57 = vadd.f32 %v1822_v25, %v3927_v63  ;;  %v2892_v62 = vpop.f32.mrb[25].mxu0 }
 0xa3e   : > { %v1825_v50 = vpop.f32.mrb[26].mxu0 }
 0xa3f   : > { %v1846_v58 = vadd.f32 %v1825_v50, %v3930_v5  ;;  %v2893_v30 = vpop.f32.mrb[27].mxu0 }
 0xa6f   : > { %v1830_v49 = vpop.f32.mrb[28].mxu0 }
 0xa70   : > { %v1847_v51 = vadd.f32 %v1830_v49, %v3933_v11  ;;  %v2896_v1 = vpop.f32.mrb[29].mxu0  ;;  %v2677_v11 = vld [vmem:[%s4168_s30] ss:$0 sm:$0xff] }
 0xa71   : > { %v1833_v10 = vpop.f32.mrb[30].mxu0 }
 0xa72   : > { %v1848_v0 = vadd.f32 %v1833_v10, %v3936_v14  ;;  %v2897_v9 = vpop.f32.mrb[31].mxu0  ;;  %v3188_v14 = vld [vmem:[%s4162_s25] sm:$0xff] }
 0xa77   : > { %v1838_v60 = vpop.f32.mrb[32].mxu0 }
 0xa78   : > { %v1849_v13 = vadd.f32 %v1838_v60, %v3939_v41  ;;  %v2900_v24 = vpop.f32.mrb[33].mxu0 }
 0xa79   : > { %v1841_v31 = vpop.f32.mrb[34].mxu0 }
 0xa7a   : > { %v1850_v63 = vadd.f32 %v1841_v31, %v3942_v16  ;;  %v2901_v32 = vpop.f32.mrb[35].mxu0 }
 0xa93   : > { %v2059_v17 = vpop.f32.mrb[36].mxu0 }
 0xa94   : > { %v2082_v5 = vadd.f32 %v2059_v17, %v1845_v57  ;;  %v2928_v18 = vpop.f32.mrb[37].mxu0 }
 0xa95   : > { %v2062_v36 = vpop.f32.mrb[38].mxu0 }
 0xa96   : > { %v2088_v19 = vadd.f32 %v3188_v14, %v2082_v5  ;;  %v2083_v41 = vadd.f32 %v2062_v36, %v1846_v58  ;;  %v2929_v29 = vpop.f32.mrb[39].mxu0 }
 0xa98   : > { %v3986_v53 = vadd.f32 %v2677_v11, %v2088_v19  ;;  %v2089_v16 = vadd.f32 %v3189_v52, %v2083_v41 }
 0xa9a   : > { %v3991_v21 = vadd.f32 %v2677_v11, %v2089_v16  ;;  %v2109_v55 = vsel %vm938_vm3, %v3986_v53, 0.0  ;;  %v3034_v16 = vld [vmem:[%s3352_s8] sm:$0xff]  }
 0xa9b   : > { %2110 = vadd.xlane.f32.xlu0 %v2109_v55  ;;  %v2067_v22 = vpop.f32.mrb[40].mxu0  ;;  %2939 = vmatpush3.bf16.msra.mxu1 %v3034_v16  ;;  %v3035_v55 = vld [vmem:[%s3352_s8 + $0x8] sm:$0xff]   ;;  %v2680_v16 = vld [vmem:[%s4170_s27] ss:$0 sm:$0xff] }
 0xa9c   : > { %v2084_v23 = vadd.f32 %v2067_v22, %v1847_v51  ;;  %v2932_v27 = vpop.f32.mrb[41].mxu0  ;;  %v2112_v28 = vsel %vm938_vm3, %v3991_v21, 0.0  ;;  %2940 = vmatprep.subr.bf16.mxu1 %v3205_v15 }
 0xa9d   : > { %2113 = vadd.xlane.f32.xlu1 %v2112_v28  ;;  %v2070_v61 = vpop.f32.mrb[42].mxu0 }
 0xa9e   : > { %v2090_v37 = vadd.f32 %v3190_v33, %v2084_v23  ;;  %v2085_v2 = vadd.f32 %v2070_v61, %v1848_v0  ;;  %v2933_v44 = vpop.f32.mrb[43].mxu0 }
 0xa9f   : > { %2941 = vmatpush3.bf16.msra.mxu1 %v3035_v55 }
 0xaa0   : > { %v4000_v4 = vadd.f32 %v2677_v11, %v2090_v37  ;;  %v2091_v34 = vadd.f32 %v3191_v20, %v2085_v2 }
 0xaa2   : > { %v4005_v35 = vadd.f32 %v2677_v11, %v2091_v34  ;;  %v2115_v26 = vsel %vm938_vm3, %v4000_v4, 0.0 }
 0xaa3   : > { %2116 = vadd.xlane.f32.xlu0 %v2115_v26  ;;  %v2075_v45 = vpop.f32.mrb[44].mxu0 }
 0xaa4   : > { %v2086_v12 = vadd.f32 %v2075_v45, %v1849_v13  ;;  %v2936_v38 = vpop.f32.mrb[45].mxu0  ;;  %v2118_v48 = vsel %vm938_vm3, %v4005_v35, 0.0  ;;  %v2678_v45 = vld [vmem:[%s4169_s28] ss:$0 sm:$0xff] }
 0xaa5   : > { %v2078_v43 = vpop.f32.mrb[46].mxu0 }
 0xaa6   : > { %v2092_v56 = vadd.f32 %v3192_v46, %v2086_v12  ;;  %v2087_v59 = vadd.f32 %v2078_v43, %v1850_v63  ;;  %v2937_v47 = vpop.f32.mrb[47].mxu0 }
 0xaa7   : > { %2119 = vadd.xlane.f32.xlu0 %v2118_v48 }
 0xaa8   : > { %v4014_v42 = vadd.f32 %v2677_v11, %v2092_v56  ;;  %v2093_v8 = vadd.f32 %v3193_v7, %v2087_v59  ;;  %v2679_v7 = vld [vmem:[%s672_s7] ss:$0 sm:$0xff] }
 0xaaa   : > { %v4019_v39 = vadd.f32 %v2677_v11, %v2093_v8  ;;  %v2121_v6 = vsel %vm938_vm3, %v4014_v42, 0.0 }
 0xaab   : > { %2122 = vadd.xlane.f32.xlu0 %v2121_v6 }
 0xaac   : > { %v2124_v3 = vsel %vm938_vm3, %v4019_v39, 0.0 }
 0xaad   : > { %2125 = vadd.xlane.f32.xlu1 %v2124_v3 }
 0xb28   : > { %v2111_v40 = vpop.xlane.xlu0 %2110 }
 0xb29   : > { %v2127_v54 = vmul.f32 0.03125, %v2111_v40 }
 0xb2a   : > { %v2114_v25 = vpop.xlane.xlu1 %2113 }
 0xb2b   : > { %v2133_v57 = vsub.f32 %v3986_v53, %v2127_v54  ;;  %v2128_v62 = vmul.f32 0.03125, %v2114_v25 }
 0xb2d   : > { %v2134_v50 = vsub.f32 %v3991_v21, %v2128_v62  ;;  %v2139_v58 = vmul.f32 %v2133_v57, %v2133_v57 }
 0xb2f   : > { %v2145_v30 = vsel %vm938_vm3, %v2139_v58, 0.0  ;;  %v2140_v49 = vmul.f32 %v2134_v50, %v2134_v50 }
 0xb30   : > { %v2117_v51 = vpop.xlane.xlu0 %2116  ;;  %2146 = vadd.xlane.f32.xlu0 %v2145_v30 }
 0xb31   : > { %v2129_v1 = vmul.f32 0.03125, %v2117_v51  ;;  %v2148_v10 = vsel %vm938_vm3, %v2140_v49, 0.0 }
 0xb32   : > { %2149 = vadd.xlane.f32.xlu1 %v2148_v10 }
 0xb33   : > { %v2135_v0 = vsub.f32 %v4000_v4, %v2129_v1 }
 0xb34   : > { %v2120_v9 = vpop.xlane.xlu0 %2119 }
 0xb35   : > { %v2130_v60 = vmul.f32 0.03125, %v2120_v9  ;;  %v2141_v13 = vmul.f32 %v2135_v0, %v2135_v0 }
 0xb37   : > { %v4031_v24 = vsub.f32 %v4005_v35, %v2130_v60  ;;  %v2151_v31 = vsel %vm938_vm3, %v2141_v13, 0.0 }
 0xb38   : > { %2152 = vadd.xlane.f32.xlu0 %v2151_v31  ;;  %v2123_v63 = vpop.xlane.xlu0 %2122 }
 0xb39   : > { %v2131_v32 = vmul.f32 0.03125, %v2123_v63  ;;  %v2142_v17 = vmul.f32 %v4031_v24, %v4031_v24 }
 0xb3a   : > { %v2126_v5 = vpop.xlane.xlu1 %2125 }
 0xb3b   : > { %v2137_v18 = vsub.f32 %v4014_v42, %v2131_v32  ;;  %v2132_v11 = vmul.f32 0.03125, %v2126_v5  ;;  %v2154_v36 = vsel %vm938_vm3, %v2142_v17, 0.0 }
 0xb3c   : > { %2155 = vadd.xlane.f32.xlu1 %v2154_v36  ;;  %v3038_v36 = vld [vmem:[%s3366_s18 + $0x10] sm:$0xff]  }
 0xb3d   : > { %v2138_v14 = vsub.f32 %v4019_v39, %v2132_v11  ;;  %v2143_v19 = vmul.f32 %v2137_v18, %v2137_v18  ;;  %v3037_v11 = vld [vmem:[%s3366_s18 + $0x8] sm:$0xff]  }
 0xb3f   : > { %v2157_v41 = vsel %vm938_vm3, %v2143_v19, 0.0  ;;  %v2144_v29 = vmul.f32 %v2138_v14, %v2138_v14  ;;  %v3040_v19 = vld [vmem:[%s3366_s18 + $0x20] sm:$0xff]  }
 0xb40   : > { %2158 = vadd.xlane.f32.xlu0 %v2157_v41  ;;  %v3041_v41 = vld [vmem:[%s3366_s18 + $0x28] sm:$0xff]  }
 0xb41   : > { %v2160_v52 = vsel %vm938_vm3, %v2144_v29, 0.0  ;;  %v3042_v29 = vld [vmem:[%s3366_s18 + $0x30] sm:$0xff]  }
 0xb42   : > { %2161 = vadd.xlane.f32.xlu1 %v2160_v52  ;;  %v3043_v52 = vld [vmem:[%s3366_s18 + $0x38] sm:$0xff]  }
 0xbbd   : > { %v2147_v22 = vpop.xlane.xlu0 %2146 }
 0xbbe   : > { %v2163_v23 = vmul.f32 0.03125, %v2147_v22 }
 0xbbf   : > { %v2150_v27 = vpop.xlane.xlu1 %2149 }
 0xbc0   : > { %v2169_v28 = vadd.f32 1e-05, %v2163_v23  ;;  %v2164_v61 = vmul.f32 0.03125, %v2150_v27 }
 0xbc2   : > { %3152 = vrsqrt.f32 %v2169_v28  ;;  %v2170_v33 = vadd.f32 1e-05, %v2164_v61 }
 0xbc4   : > { %3154 = vrsqrt.f32 %v2170_v33 }
 0xbc5   : > { %v2153_v37 = vpop.xlane.xlu0 %2152 }
 0xbc6   : > { %v2165_v2 = vmul.f32 0.03125, %v2153_v37 }
 0xbc8   : > { %v2171_v44 = vadd.f32 1e-05, %v2165_v2 }
 0xbc9   : > { %v2156_v20 = vpop.xlane.xlu1 %2155 }
 0xbca   : > { %3156 = vrsqrt.f32 %v2171_v44  ;;  %v2166_v34 = vmul.f32 0.03125, %v2156_v20 }
 0xbcc   : > { %v3153_v26 = vpop.eup %3152  ;;  %v2172_v12 = vadd.f32 1e-05, %v2166_v34 }
 0xbcd   : > { %v2181_v38 = vmul.f32 %v3153_v26, %v2133_v57  ;;  %v2159_v43 = vpop.xlane.xlu0 %2158 }
 0xbce   : > { %v3155_v46 = vpop.eup %3154  ;;  %3158 = vrsqrt.f32 %v2172_v12  ;;  %v2167_v56 = vmul.f32 0.03125, %v2159_v43 }
 0xbcf   : > { %v2193_v59 = vmul.f32 %v2678_v45, %v2181_v38  ;;  %v2182_v47 = vmul.f32 %v3155_v46, %v2134_v50  ;;  %v2162_v48 = vpop.xlane.xlu1 %2161 }
 0xbd0   : > { %v2173_v8 = vadd.f32 1e-05, %v2167_v56  ;;  %v2168_v6 = vmul.f32 0.03125, %v2162_v48 }
 0xbd1   : > { %v2194_v3 = vmul.f32 %v2678_v45, %v2182_v47  ;;  %v2205_v54 = vadd.f32 %v2679_v7, %v2193_v59 }
 0xbd2   : > { %3160 = vrsqrt.f32 %v2173_v8  ;;  %v2174_v40 = vadd.f32 1e-05, %v2168_v6 }
 0xbd3   : > { %v2206_v25 = vadd.f32 %v2679_v7, %v2194_v3 }
 0xbd4   : > { %v3157_v57 = vpop.eup %3156  ;;  %3162 = vrsqrt.f32 %v2174_v40 }
 0xbd5   : > { %v2183_v62 = vmul.f32 %v3157_v57, %v2135_v0  ;;  %v2211_v58 = vpack.c.bf16 %v2206_v25, %v2205_v54 }
 0xbd7   : > { %2943 = vmatmul.mubr.msk.bf16.vlgmr.msra.gmra.mrb[60].mxu1 %vm938_vm3, %v2211_v58  ;;  %v2195_v49 = vmul.f32 %v2678_v45, %v2183_v62 }
 0xbd8   : > { %v3159_v50 = vpop.eup %3158  ;;  %2946 = vmatprep.mubr.msk.bf16.mxu1 %vm3207_vm4, %v3205_v15 }
 0xbd9   : > { %v2184_v30 = vmul.f32 %v3159_v50, %v4031_v24  ;;  %v2207_v9 = vadd.f32 %v2679_v7, %v2195_v49 }
 0xbdb   : > { %v2196_v51 = vmul.f32 %v2678_v45, %v2184_v30 }
 0xbdc   : > { %v3161_v1 = vpop.eup %3160 }
 0xbdd   : > { %v2185_v10 = vmul.f32 %v3161_v1, %v2137_v18  ;;  %v2208_v60 = vadd.f32 %v2679_v7, %v2196_v51  ;;  %v3036_v18 = vld [vmem:[%s3366_s18] sm:$0xff]  }
 0xbde   : > { %v3163_v13 = vpop.eup %3162  ;;  %2955 = vmatpush3.bf16.msra.mxu0 %v3036_v18 }
 0xbdf   : > { %v2186_v31 = vmul.f32 %v3163_v13, %v2138_v14  ;;  %v2212_v0 = vpack.c.bf16 %v2208_v60, %v2207_v9  ;;  %v2197_v63 = vmul.f32 %v2678_v45, %v2185_v10  ;;  %2956 = vmatprep.subr.bf16.mxu0 %v3205_v15  ;;  %v3039_v14 = vld [vmem:[%s3366_s18 + $0x18] sm:$0xff]  }
 0xbe1   : > { %2947 = vmatmul.mubr.msk.bf16.gmra.mrb[64].mxu1 %vm938_vm3, %v2212_v0  ;;  %v2198_v32 = vmul.f32 %v2678_v45, %v2186_v31  ;;  %v2209_v17 = vadd.f32 %v2679_v7, %v2197_v63 }
 0xbe2   : > { %2950 = vmatprep.mubr.msk.bf16.mxu1 %vm3207_vm4, %v3205_v15  ;;  %2957 = vmatpush3.bf16.msra.mxu0 %v3037_v11 }
 0xbe3   : > { %v2210_v24 = vadd.f32 %v2679_v7, %v2198_v32  ;;  %2958 = vmatprep.subr.bf16.mxu0 %v3205_v15 }
 0xbe5   : > { %v2213_v5 = vpack.c.bf16 %v2210_v24, %v2209_v17 }
 0xbe6   : > { %2959 = vmatpush3.bf16.msra.mxu0 %v3038_v36 }
 0xbe7   : > { %2960 = vmatprep.subr.bf16.mxu0 %v3205_v15 }
 0xbe9   : > { %2951 = vmatmul.mubr.msk.bf16.gmra.mrb[68].mxu1 %vm938_vm3, %v2213_v5 }
 0xbea   : > { %2961 = vmatpush3.bf16.msra.mxu0 %v3039_v14 }
 0xbeb   : > { %2962 = vmatprep.subr.bf16.mxu0 %v3205_v15 }
 0xbee   : > { %2963 = vmatpush3.bf16.msra.mxu0 %v3040_v19 }
 0xbef   : > { %2964 = vmatprep.subr.bf16.mxu0 %v3205_v15 }
 0xbf2   : > { %2965 = vmatpush3.bf16.msra.mxu0 %v3041_v41 }
 0xbf3   : > { %2966 = vmatprep.subr.bf16.mxu0 %v3205_v15 }
 0xbf6   : > { %2967 = vmatpush3.bf16.msra.mxu0 %v3042_v29 }
 0xbf7   : > { %2968 = vmatprep.subr.bf16.mxu0 %v3205_v15 }
 0xbfa   : > { %2969 = vmatpush3.bf16.msra.mxu0 %v3043_v52 }
 0xcaa   : > { %v2280_v55 = vpop.f32.mrb[60].mxu1 }
 0xcab   : > { %v2281_v22 = vadd.f32 %v2680_v16, %v2280_v55  ;;  %v2944_v23 = vpop.f32.mrb[61].mxu1  ;;  %v2692_v55 = vld [vmem:[%s4171_s1] ss:$0 sm:$0xff] }
 0xcac   : > { %v2283_v27 = vpop.f32.mrb[62].mxu1 }
 0xcad   : > { %v2686_v28 = vmul.f32 -1.702, %v2281_v22  ;;  %v2284_v61 = vadd.f32 %v2680_v16, %v2283_v27  ;;  %v2945_v33 = vpop.f32.mrb[63].mxu1 }
 0xcaf   : > { %v2315_v37 = vmul.f32 1.442695, %v2686_v28  ;;  %v2687_v2 = vmul.f32 -1.702, %v2284_v61 }
 0xcb1   : > { %3164 = vpow2.f32 %v2315_v37  ;;  %v2317_v44 = vmul.f32 1.442695, %v2687_v2 }
 0xcb3   : > { %3166 = vpow2.f32 %v2317_v44 }
 0xcb4   : > { %v2288_v20 = vpop.f32.mrb[64].mxu1 }
 0xcb5   : > { %v2289_v34 = vadd.f32 %v2680_v16, %v2288_v20  ;;  %v2948_v26 = vpop.f32.mrb[65].mxu1 }
 0xcb6   : > { %v2291_v45 = vpop.f32.mrb[66].mxu1 }
 0xcb7   : > { %v2688_v12 = vmul.f32 -1.702, %v2289_v34  ;;  %v2292_v38 = vadd.f32 %v2680_v16, %v2291_v45  ;;  %v2949_v43 = vpop.f32.mrb[67].mxu1 }
 0xcb9   : > { %v2319_v46 = vmul.f32 1.442695, %v2688_v12  ;;  %v2689_v56 = vmul.f32 -1.702, %v2292_v38 }
 0xcbb   : > { %v3165_v59 = vpop.eup %3164  ;;  %3168 = vpow2.f32 %v2319_v46  ;;  %v2321_v47 = vmul.f32 1.442695, %v2689_v56 }
 0xcbc   : > { %v2327_v48 = vadd.f32 1.0, %v3165_v59  ;;  %v2296_v7 = vpop.f32.mrb[68].mxu1 }
 0xcbd   : > { %v3167_v8 = vpop.eup %3166  ;;  %3170 = vpow2.f32 %v2321_v47  ;;  %v2297_v6 = vadd.f32 %v2680_v16, %v2296_v7  ;;  %v2952_v3 = vpop.f32.mrb[69].mxu1 }
 0xcbe   : > { %3172 = vrcp.f32 %v2327_v48  ;;  %v2328_v40 = vadd.f32 1.0, %v3167_v8  ;;  %v2299_v54 = vpop.f32.mrb[70].mxu1 }
 0xcbf   : > { %v2690_v25 = vmul.f32 -1.702, %v2297_v6  ;;  %v2300_v57 = vadd.f32 %v2680_v16, %v2299_v54  ;;  %v2953_v62 = vpop.f32.mrb[71].mxu1 }
 0xcc0   : > { %3174 = vrcp.f32 %v2328_v40 }
 0xcc1   : > { %v2323_v58 = vmul.f32 1.442695, %v2690_v25  ;;  %v2691_v50 = vmul.f32 -1.702, %v2300_v57 }
 0xcc3   : > { %3176 = vpow2.f32 %v2323_v58  ;;  %v2325_v30 = vmul.f32 1.442695, %v2691_v50 }
 0xcc5   : > { %v3169_v49 = vpop.eup %3168  ;;  %3178 = vpow2.f32 %v2325_v30 }
 0xcc6   : > { %v2329_v51 = vadd.f32 1.0, %v3169_v49 }
 0xcc7   : > { %v3171_v1 = vpop.eup %3170 }
 0xcc8   : > { %v3173_v10 = vpop.eup %3172  ;;  %3180 = vrcp.f32 %v2329_v51  ;;  %v2330_v9 = vadd.f32 1.0, %v3171_v1 }
 0xcc9   : > { %v2345_v13 = vmul.f32 %v3173_v10, %v2281_v22 }
 0xcca   : > { %v3175_v60 = vpop.eup %3174  ;;  %3182 = vrcp.f32 %v2330_v9 }
 0xccb   : > { %v2346_v31 = vmul.f32 %v3175_v60, %v2284_v61 }
 0xccd   : > { %v3177_v0 = vpop.eup %3176  ;;  %v2351_v63 = vpack.c.bf16 %v2346_v31, %v2345_v13 }
 0xcce   : > { %v2331_v32 = vadd.f32 1.0, %v3177_v0 }
 0xccf   : > { %v3179_v24 = vpop.eup %3178  ;;  %2971 = vmatmul.mubr.bf16.vlgmr.msra.gmra.mrb[48].mxu0 %v2351_v63 }
 0xcd0   : > { %3184 = vrcp.f32 %v2331_v32  ;;  %v2332_v17 = vadd.f32 1.0, %v3179_v24  ;;  %2974 = vmatprep.mubr.msk.bf16.mxu0 %vm3207_vm4, %v3205_v15 }
 0xcd2   : > { %v3181_v5 = vpop.eup %3180  ;;  %3186 = vrcp.f32 %v2332_v17 }
 0xcd3   : > { %v2347_v11 = vmul.f32 %v3181_v5, %v2289_v34 }
 0xcd4   : > { %v3183_v18 = vpop.eup %3182 }
 0xcd5   : > { %v2348_v36 = vmul.f32 %v3183_v18, %v2292_v38 }
 0xcd7   : > { %v2352_v14 = vpack.c.bf16 %v2348_v36, %v2347_v11 }
 0xcd9   : > { %2975 = vmatmul.mubr.bf16.gmra.mrb[52].mxu0 %v2352_v14 }
 0xcda   : > { %v3185_v19 = vpop.eup %3184  ;;  %2978 = vmatprep.mubr.msk.bf16.mxu0 %vm3207_vm4, %v3205_v15 }
 0xcdb   : > { %v2349_v29 = vmul.f32 %v3185_v19, %v2297_v6 }
 0xcdc   : > { %v3187_v41 = vpop.eup %3186 }
 0xcdd   : > { %v2350_v52 = vmul.f32 %v3187_v41, %v2300_v57 }
 0xcdf   : > { %v2353_v16 = vpack.c.bf16 %v2350_v52, %v2349_v29 }
 0xce1   : > { %2979 = vmatmul.mubr.bf16.gmra.mrb[56].mxu0 %v2353_v16 }
 0xda2   : > { %v2459_v22 = vpop.f32.mrb[48].mxu0 }
 0xda3   : > { %v2460_v23 = vadd.f32 %v2692_v55, %v2459_v22  ;;  %v2972_v27 = vpop.f32.mrb[49].mxu0 }
 0xda4   : > { %v2462_v28 = vpop.f32.mrb[50].mxu0 }
 0xda5   : > { %v2482_v61 = vadd.f32 %v2460_v23, %v3986_v53  ;;  %v2463_v33 = vadd.f32 %v2692_v55, %v2462_v28  ;;  %v2973_v37 = vpop.f32.mrb[51].mxu0 }
 0xda7   : > { %2488 = vst.msk [vmem:[%s4162_s25] sm:$0xff] %vm938_vm3, %v2482_v61  ;;  %v2483_v15 = vadd.f32 %v2463_v33, %v3991_v21 }
 0xda9   : > { %2489 = vst.msk [vmem:[%s4162_s25 + $0x8] sm:$0xff] %vm938_vm3, %v2483_v15 }
 0xdac   : > { %v2467_v2 = vpop.f32.mrb[52].mxu0 }
 0xdad   : > { %v2468_v44 = vadd.f32 %v2692_v55, %v2467_v2  ;;  %v2976_v20 = vpop.f32.mrb[53].mxu0 }
 0xdae   : > { %v2470_v34 = vpop.f32.mrb[54].mxu0 }
 0xdaf   : > { %v2484_v53 = vadd.f32 %v2468_v44, %v4000_v4  ;;  %v2471_v26 = vadd.f32 %v2692_v55, %v2470_v34  ;;  %v2977_v45 = vpop.f32.mrb[55].mxu0 }
 0xdb1   : > { %2490 = vst.msk [vmem:[%s4162_s25 + $0x10] sm:$0xff] %vm938_vm3, %v2484_v53  ;;  %v2485_v21 = vadd.f32 %v2471_v26, %v4005_v35 }
 0xdb3   : > { %2491 = vst.msk [vmem:[%s4162_s25 + $0x18] sm:$0xff] %vm938_vm3, %v2485_v21 }
 0xdb4   : > { %v2475_v12 = vpop.f32.mrb[56].mxu0 }
 0xdb5   : > { %v2476_v38 = vadd.f32 %v2692_v55, %v2475_v12  ;;  %v2980_v43 = vpop.f32.mrb[57].mxu0 }
 0xdb6   : > { %v2478_v46 = vpop.f32.mrb[58].mxu0 }
 0xdb7   : > { %v2486_v4 = vadd.f32 %v2476_v38, %v4014_v42  ;;  %v2479_v56 = vadd.f32 %v2692_v55, %v2478_v46  ;;  %v2981_v59 = vpop.f32.mrb[59].mxu0 }
 0xdb9   : > { %2492 = vst.msk [vmem:[%s4162_s25 + $0x20] sm:$0xff] %vm938_vm3, %v2486_v4  ;;  %v2487_v35 = vadd.f32 %v2479_v56, %v4019_v39 }
 0xdbb   : > { %2493 = vst.msk [vmem:[%s4162_s25 + $0x28] sm:$0xff] %vm938_vm3, %v2487_v35 }
 0xdbc PF: > { %s4172_s27 = sld [smem:[#allocation2_spill]] }
 0xdc2   : > { %s27_s24 = sadd.s32 1, %s4172_s27  }
 0xdc3   : > { %p24_p5 = scmp.ge.s32.totalorder %s27_s24, 4  }
 0xdc5   :  { %26 = sbr.rel (!%p24_p5) target bundleno = 8 (0x8), region = 148 }

</bundles_post_ra>
